<compile_context>
chip_gen: v7x
topology: tpu7x:2x2x1
jax: 0.10.0
libtpu: 0.0.40
codegen_flags: <defaults>
</compile_context>

<pallas_src>
import functools

import jax
import jax.numpy as jnp
from jax.experimental import pallas as pl
from jax.experimental.pallas import tpu as pltpu


def _muse_lstm_kernel(x_ref, w_ih_ref, w_hh_ref, b_ref, w_out_ref, b_out_ref,
                      out_ref, h_ref, c_ref, xp_ref, *,
                      chunk_steps, batch_p, seq_len):
    Hp = w_hh_ref.shape[0]
    chunk = pl.program_id(0)
    n_chunks = pl.num_programs(0)

    # h/c scratch persists across grid iterations; initialize on first chunk.
    @pl.when(chunk == 0)
    def _init():
        h_ref[...] = jnp.zeros_like(h_ref)
        c_ref[...] = jnp.zeros_like(c_ref)

    # Per-chunk hoisted input projection: one bf16 MXU matmul, f32 accumulate.
    xp_ref[...] = (
        jnp.dot(x_ref[...], w_ih_ref[...], preferred_element_type=jnp.float32)
        + b_ref[...])                                      # (chunk*Bp, 4*Hp) f32

    t0 = chunk * chunk_steps

    def step(i, carry):
        h, c = carry
        start = pl.multiple_of(i * batch_p, batch_p)
        # Read W_hh from VMEM every step (don't hoist: the tile would pin the
        # vreg file and force spills of h/c/gate temporaries).
        gates = xp_ref[pl.ds(start, batch_p), :] + jnp.dot(
            h.astype(jnp.bfloat16), w_hh_ref[...],
            preferred_element_type=jnp.float32)            # (Bp, 4*Hp) f32
        # PyTorch LSTM gate order: i, f, g, o — each slice is a whole 128-lane
        # tile because Hp is a multiple of 128. Gate math stays f32.
        i_g = jax.nn.sigmoid(gates[:, 0 * Hp:1 * Hp])
        f_g = jax.nn.sigmoid(gates[:, 1 * Hp:2 * Hp])
        g_g = jnp.tanh(gates[:, 2 * Hp:3 * Hp])
        o_g = jax.nn.sigmoid(gates[:, 3 * Hp:4 * Hp])
        c_new = f_g * c + i_g * g_g
        h_new = o_g * jnp.tanh(c_new)
        # Mask timesteps past the true sequence length (tail padding of the
        # last chunk): arithmetic blend with a 0/1 scalar.
        valid = ((t0 + i) < seq_len).astype(jnp.float32)
        h_out = valid * h_new + (1.0 - valid) * h
        c_out = valid * c_new + (1.0 - valid) * c
        return h_out, c_out

    unroll = 4 if chunk_steps >= 4 else True
    h_last, c_last = jax.lax.fori_loop(
        0, chunk_steps, step, (h_ref[...], c_ref[...]), unroll=unroll)
    h_ref[...] = h_last
    c_ref[...] = c_last

    # Fused, lane-dense output head — only on the last chunk.
    @pl.when(chunk == n_chunks - 1)
    def _finalize():
        out_ref[...] = (
            jnp.dot(h_last.astype(jnp.bfloat16), w_out_ref[...],
                    preferred_element_type=jnp.float32)
            + b_out_ref[...])


def _round_up(n, m):
    return ((n + m - 1) // m) * m


def _pad_gate_cols(w, h, hp):
    """Pad each of the 4 gate blocks (last axis, width h) to width hp."""
    if hp == h:
        return w
    lead = w.shape[:-1]
    w4 = w.reshape(*lead, 4, h)
    w4 = jnp.pad(w4, [(0, 0)] * len(lead) + [(0, 0), (0, hp - h)])
    return w4.reshape(*lead, 4 * hp)


def _vmem_limit_bytes():
    """Per-chip VMEM budget (v5e/v6e: 128 MiB, v7x: 64 MiB per TC)."""
    cap = None
    try:
        cap = getattr(pltpu.get_tpu_info(), "vmem_capacity_bytes", None)
    except Exception:
        cap = None
    if not cap:
        cap = 64 * 1024 * 1024        # conservative fallback (v7x per-TC)
    return int(min(max(cap * 4 // 5, 32 * 1024 * 1024), 112 * 1024 * 1024))


def _choose_chunk_steps(T, Bp, E2p, Hp, vmem_limit_bytes):
    """Largest T-chunk whose pipeline-resident buffers fit the VMEM budget."""
    # Per timestep: double-buffered bf16 x block + f32 xp scratch, per row.
    per_step = Bp * (2 * 2 * E2p + 4 * 4 * Hp)
    budget = vmem_limit_bytes // 2    # headroom for weights / output / temps
    return int(max(1, min(T, budget // max(per_step, 1), 512)))


def muse_lstm_forward(x, params, *, chunk_steps=None):
    """x: int32 (B, T, 2). Returns (note_logits (B, Vn), dur_logits (B, Vd))."""
    note_tbl = params["note_embed"]           # (Vn, E)
    dur_tbl = params["dur_embed"]             # (Vd, E)
    w_ih = params["w_ih"]                     # (2E, 4H)  (= W_ih.T)
    w_hh = params["w_hh"]                     # (H, 4H)   (= W_hh.T)
    b = params["b"]                           # (1, 4H)   (= b_ih + b_hh)
    wn = params["w_note_out"]                 # (H, Vn)
    bn = params["b_note_out"]                 # (1, Vn)
    wd = params["w_dur_out"]                  # (H, Vd)
    bd = params["b_dur_out"]                  # (1, Vd)

    B, T, _ = x.shape
    E2 = w_ih.shape[0]
    H = w_hh.shape[0]
    Vn = wn.shape[1]
    Vd = wd.shape[1]

    # Padded, TPU-tile-aligned dimensions.
    Bp = _round_up(B, 8)           # sublane width
    Hp = _round_up(H, 128)         # lane width -> gate slices are whole tiles
    E2p = _round_up(E2, 128)
    Vp = _round_up(Vn + Vd, 128)   # fused, lane-dense output head

    vmem_limit = _vmem_limit_bytes()
    if chunk_steps is None:
        chunk_steps = _choose_chunk_steps(T, Bp, E2p, Hp, vmem_limit)
    if Bp % 16 != 0 and chunk_steps % 2 != 0:
        chunk_steps += 1           # keep bf16 x blocks on full (16,128) tiles
    n_chunks = pl.cdiv(T, chunk_steps)
    T_pad = n_chunks * chunk_steps

    # ---- Glue in plain JAX: embedding gathers + layout/padding. ----
    note_emb = note_tbl[x[:, :, 0]]                                   # (B, T, E)
    dur_emb = dur_tbl[x[:, :, 1]]                                     # (B, T, E)
    combined = jnp.concatenate([note_emb, dur_emb], axis=-1)          # (B, T, 2E)
    x_emb = jnp.transpose(combined, (1, 0, 2)).astype(jnp.bfloat16)   # (T, B, 2E)
    x_emb = jnp.pad(x_emb, ((0, T_pad - T), (0, Bp - B), (0, E2p - E2)))
    x_flat = x_emb.reshape(T_pad * Bp, E2p)                           # bf16

    # Gate-aware zero padding keeps padded hidden units inert (h = c = 0).
    # MXU operands in bf16; biases stay f32.
    w_ih_p = jnp.pad(_pad_gate_cols(w_ih, H, Hp),
                     ((0, E2p - E2), (0, 0))).astype(jnp.bfloat16)
    w_hh_p = jnp.pad(_pad_gate_cols(w_hh, H, Hp),
                     ((0, Hp - H), (0, 0))).astype(jnp.bfloat16)
    b_p = _pad_gate_cols(b, H, Hp).astype(jnp.float32)                # (1, 4Hp)

    w_out = jnp.concatenate([wn, wd], axis=1)                         # (H, Vn+Vd)
    w_out_p = jnp.pad(w_out, ((0, Hp - H),
                              (0, Vp - (Vn + Vd)))).astype(jnp.bfloat16)
    b_out_p = jnp.pad(jnp.concatenate([bn, bd], axis=1),
                      ((0, 0), (0, Vp - (Vn + Vd)))).astype(jnp.float32)

    kernel = functools.partial(_muse_lstm_kernel, chunk_steps=chunk_steps,
                               batch_p=Bp, seq_len=T)

    grid_spec = pltpu.PrefetchScalarGridSpec(
        num_scalar_prefetch=0,
        grid=(n_chunks,),
        in_specs=[
            pl.BlockSpec((chunk_steps * Bp, E2p), lambda c: (c, 0)),  # x chunk
            pl.BlockSpec((E2p, 4 * Hp), lambda c: (0, 0)),            # W_ih
            pl.BlockSpec((Hp, 4 * Hp), lambda c: (0, 0)),             # W_hh
            pl.BlockSpec((1, 4 * Hp), lambda c: (0, 0)),              # bias
            pl.BlockSpec((Hp, Vp), lambda c: (0, 0)),                 # W_out
            pl.BlockSpec((1, Vp), lambda c: (0, 0)),                  # b_out
        ],
        out_specs=pl.BlockSpec((Bp, Vp), lambda c: (0, 0)),
        scratch_shapes=[
            pltpu.VMEM((Bp, Hp), jnp.float32),                        # h carry
            pltpu.VMEM((Bp, Hp), jnp.float32),                        # c carry
            pltpu.VMEM((chunk_steps * Bp, 4 * Hp), jnp.float32),      # xp
        ],
    )

    logits = pl.pallas_call(
        kernel,
        out_shape=jax.ShapeDtypeStruct((Bp, Vp), jnp.float32),
        grid_spec=grid_spec,
        compiler_params=pltpu.CompilerParams(
            dimension_semantics=("arbitrary",),
            vmem_limit_bytes=int(vmem_limit)),
    )(x_flat, w_ih_p, w_hh_p, b_p, w_out_p, b_out_p)

    note_logits = logits[:B, :Vn]
    dur_logits = logits[:B, Vn:Vn + Vd]
    return note_logits, dur_logits


def reference_forward(x, params, matmul_dtype=jnp.float32):
    """Pure-JAX reference matching torch semantics.

    matmul_dtype=jnp.bfloat16 gives a reference numerically consistent with the
    kernel's bf16-operand / f32-accumulate matmuls.
    """
    note_tbl = params["note_embed"]
    dur_tbl = params["dur_embed"]
    w_ih, w_hh, b = params["w_ih"], params["w_hh"], params["b"]
    wn, bn = params["w_note_out"], params["b_note_out"]
    wd, bd = params["w_dur_out"], params["b_dur_out"]
    H = w_hh.shape[0]

    def mm(a, bm):
        return jnp.dot(a.astype(matmul_dtype), bm.astype(matmul_dtype),
                       preferred_element_type=jnp.float32)

    note_emb = note_tbl[x[:, :, 0]]
    dur_emb = dur_tbl[x[:, :, 1]]
    combined = jnp.concatenate([note_emb, dur_emb], axis=-1)   # (B, T, 2E)
    x_emb = jnp.transpose(combined, (1, 0, 2))                 # (T, B, 2E)

    B = x.shape[0]
    h0 = jnp.zeros((B, H), jnp.float32)
    c0 = jnp.zeros((B, H), jnp.float32)

    def step(carry, x_t):
        h, c = carry
        gates = mm(x_t, w_ih) + mm(h, w_hh) + b
        i = jax.nn.sigmoid(gates[:, 0 * H:1 * H])
        f = jax.nn.sigmoid(gates[:, 1 * H:2 * H])
        g = jnp.tanh(gates[:, 2 * H:3 * H])
        o = jax.nn.sigmoid(gates[:, 3 * H:4 * H])
        c = f * c + i * g
        h = o * jnp.tanh(c)
        return (h, c), None

    (h_last, _), _ = jax.lax.scan(step, (h0, c0), x_emb)
    return mm(h_last, wn) + bn, mm(h_last, wd) + bd


def init_params(key, note_vocab, dur_vocab, embed_dim, hidden_dim):
    ks = jax.random.split(key, 10)
    s = 0.1
    return {
        "note_embed": s * jax.random.normal(ks[0], (note_vocab, embed_dim), jnp.float32),
        "dur_embed": s * jax.random.normal(ks[1], (dur_vocab, embed_dim), jnp.float32),
        # LSTM weights stored transposed relative to torch: (input_size, 4H)
        "w_ih": s * jax.random.normal(ks[2], (2 * embed_dim, 4 * hidden_dim), jnp.float32),
        "w_hh": s * jax.random.normal(ks[3], (hidden_dim, 4 * hidden_dim), jnp.float32),
        "b": s * jax.random.normal(ks[4], (1, 4 * hidden_dim), jnp.float32),  # b_ih + b_hh folded
        "w_note_out": s * jax.random.normal(ks[5], (hidden_dim, note_vocab), jnp.float32),
        "b_note_out": s * jax.random.normal(ks[6], (1, note_vocab), jnp.float32),
        "w_dur_out": s * jax.random.normal(ks[7], (hidden_dim, dur_vocab), jnp.float32),
        "b_dur_out": s * jax.random.normal(ks[8], (1, dur_vocab), jnp.float32),
    }


if __name__ == "__main__":
    B, T = 2, 10
    NOTE_VOCAB, DUR_VOCAB = 16, 8
    EMBED_DIM, HIDDEN_DIM = 32, 32

    key = jax.random.PRNGKey(0)
    kp, kn, kd = jax.random.split(key, 3)
    params = init_params(kp, NOTE_VOCAB, DUR_VOCAB, EMBED_DIM, HIDDEN_DIM)

    notes = jax.random.randint(kn, (B, T, 1), 0, NOTE_VOCAB, dtype=jnp.int32)
    durs = jax.random.randint(kd, (B, T, 1), 0, DUR_VOCAB, dtype=jnp.int32)
    x = jnp.concatenate([notes, durs], axis=-1)   # (B, T, 2) int32

    # chunk_steps=4 -> 3 chunks (T_pad=12): exercises the chunked pipeline,
    # the persistent h/c carry across chunks, and the masked tail timesteps.
    note_logits, dur_logits = jax.block_until_ready(
        muse_lstm_forward(x, params, chunk_steps=4))

    ref_bf16 = reference_forward(x, params, matmul_dtype=jnp.bfloat16)
    ref_f32 = reference_forward(x, params, matmul_dtype=jnp.float32)

    assert note_logits.shape == (B, NOTE_VOCAB)
    assert dur_logits.shape == (B, DUR_VOCAB)
    # Tight check against a bf16-matmul-consistent reference ...
    assert jnp.allclose(note_logits, ref_bf16[0], atol=2e-3, rtol=2e-3)
    assert jnp.allclose(dur_logits, ref_bf16[1], atol=2e-3, rtol=2e-3)
    # ... and a loose sanity check against full-f32 (PyTorch-equivalent) math.
    assert jnp.allclose(note_logits, ref_f32[0], atol=3e-2, rtol=3e-2)
    assert jnp.allclose(dur_logits, ref_f32[1], atol=3e-2, rtol=3e-2)

    print("KERNEL_OK")
</pallas_src>

<mosaic_0001>
module attributes {stable_mosaic.version = 11 : i64} {
  func.func @_muse_lstm_kernel(%arg0: i32, %arg1: memref<32x128xbf16, #tpu.memory_space<vmem>>, %arg2: memref<128x512xbf16, #tpu.memory_space<vmem>>, %arg3: memref<128x512xbf16, #tpu.memory_space<vmem>>, %arg4: memref<1x512xf32, #tpu.memory_space<vmem>>, %arg5: memref<128x128xbf16, #tpu.memory_space<vmem>>, %arg6: memref<1x128xf32, #tpu.memory_space<vmem>>, %arg7: memref<8x128xf32, #tpu.memory_space<vmem>>, %arg8: memref<8x128xf32, #tpu.memory_space<vmem>>, %arg9: memref<8x128xf32, #tpu.memory_space<vmem>>, %arg10: memref<32x512xf32, #tpu.memory_space<vmem>>) attributes {dimension_semantics = [#tpu.dimension_semantics<arbitrary>], iteration_bounds = array<i64: 3>, scalar_prefetch = 0 : i64, scratch_operands = 3 : i64, tpu.core_type = #tpu.core_type<tc>, window_params = [{transform_indices = @transform_0, window_bounds = array<i64: 32, 128>}, {pipeline_mode = #tpu.pipeline_mode<synchronous>, transform_indices = @transform_1, window_bounds = array<i64: 128, 512>}, {pipeline_mode = #tpu.pipeline_mode<synchronous>, transform_indices = @transform_2, window_bounds = array<i64: 128, 512>}, {pipeline_mode = #tpu.pipeline_mode<synchronous>, transform_indices = @transform_3, window_bounds = array<i64: 1, 512>}, {pipeline_mode = #tpu.pipeline_mode<synchronous>, transform_indices = @transform_4, window_bounds = array<i64: 128, 128>}, {pipeline_mode = #tpu.pipeline_mode<synchronous>, transform_indices = @transform_5, window_bounds = array<i64: 1, 128>}, {pipeline_mode = #tpu.pipeline_mode<synchronous>, transform_indices = @transform_6, window_bounds = array<i64: 8, 128>}]} {
    %c0_i32 = arith.constant 0 : i32
    %0 = arith.cmpi eq, %arg0, %c0_i32 : i32
    %1 = arith.extui %0 : i1 to i32
    %c0_i32_0 = arith.constant 0 : i32
    %2 = arith.cmpi ne, %1, %c0_i32_0 : i32
    scf.if %2 {
      %cst_62 = arith.constant 0.000000e+00 : f32
      %214 = vector.broadcast %cst_62 : f32 to vector<8x128xf32>
      %c0_63 = arith.constant 0 : index
      %c0_64 = arith.constant 0 : index
      %215 = vector.load %arg8[%c0_63, %c0_64] : memref<8x128xf32, #tpu.memory_space<vmem>>, vector<8x128xf32>
      tpu.vector_store %arg8[%c0_63, %c0_64], %214 {strides = array<i32>} : memref<8x128xf32, #tpu.memory_space<vmem>>, vector<8x128xf32>,
      %cst_65 = arith.constant 0.000000e+00 : f32
      %216 = vector.broadcast %cst_65 : f32 to vector<8x128xf32>
      %c0_66 = arith.constant 0 : index
      %c0_67 = arith.constant 0 : index
      %217 = vector.load %arg9[%c0_66, %c0_67] : memref<8x128xf32, #tpu.memory_space<vmem>>, vector<8x128xf32>
      tpu.vector_store %arg9[%c0_66, %c0_67], %216 {strides = array<i32>} : memref<8x128xf32, #tpu.memory_space<vmem>>, vector<8x128xf32>,
    } else {
    }
    %c0 = arith.constant 0 : index
    %c0_1 = arith.constant 0 : index
    %3 = vector.load %arg1[%c0, %c0_1] : memref<32x128xbf16, #tpu.memory_space<vmem>>, vector<32x128xbf16>
    %c0_2 = arith.constant 0 : index
    %c0_3 = arith.constant 0 : index
    %4 = vector.load %arg2[%c0_2, %c0_3] : memref<128x512xbf16, #tpu.memory_space<vmem>>, vector<128x512xbf16>
    %cst = arith.constant dense<0.000000e+00> : vector<32x512xf32>
    %5 = tpu.matmul %3, %4, %cst {dimension_numbers = #tpu.dot_dimension_numbers<[1], [0], [0], [1], [0, 0, 1, 1], [], []>} : vector<32x128xbf16>, vector<128x512xbf16>, vector<32x512xf32> -> vector<32x512xf32>
    %c0_4 = arith.constant 0 : index
    %c0_5 = arith.constant 0 : index
    %6 = vector.load %arg4[%c0_4, %c0_5] : memref<1x512xf32, #tpu.memory_space<vmem>>, vector<1x512xf32>
    %7 = vector.broadcast %6 : vector<1x512xf32> to vector<32x512xf32>
    %8 = arith.addf %5, %7 : vector<32x512xf32>
    %c0_6 = arith.constant 0 : index
    %c0_7 = arith.constant 0 : index
    %9 = vector.load %arg10[%c0_6, %c0_7] : memref<32x512xf32, #tpu.memory_space<vmem>>, vector<32x512xf32>
    tpu.vector_store %arg10[%c0_6, %c0_7], %8 {strides = array<i32>} : memref<32x512xf32, #tpu.memory_space<vmem>>, vector<32x512xf32>,
    %c4_i32 = arith.constant 4 : i32
    %10 = arith.muli %arg0, %c4_i32 : i32
    %c0_8 = arith.constant 0 : index
    %c0_9 = arith.constant 0 : index
    %11 = vector.load %arg8[%c0_8, %c0_9] : memref<8x128xf32, #tpu.memory_space<vmem>>, vector<8x128xf32>
    %c0_10 = arith.constant 0 : index
    %c0_11 = arith.constant 0 : index
    %12 = vector.load %arg9[%c0_10, %c0_11] : memref<8x128xf32, #tpu.memory_space<vmem>>, vector<8x128xf32>
    %c0_i32_12 = arith.constant 0 : i32
    %c8_i32 = arith.constant 8 : i32
    %13 = arith.muli %c0_i32_12, %c8_i32 : i32
    %14 = tpu.assume_multiple %13, 8 : i32
    %15 = arith.index_cast %14 : i32 to index
    %c0_13 = arith.constant 0 : index
    %16 = vector.load %arg10[%15, %c0_13] : memref<32x512xf32, #tpu.memory_space<vmem>>, vector<8x512xf32>
    %17 = arith.truncf %11 : vector<8x128xf32> to vector<8x128xbf16>
    %c0_14 = arith.constant 0 : index
    %c0_15 = arith.constant 0 : index
    %18 = vector.load %arg3[%c0_14, %c0_15] : memref<128x512xbf16, #tpu.memory_space<vmem>>, vector<128x512xbf16>
    %cst_16 = arith.constant dense<0.000000e+00> : vector<8x512xf32>
    %19 = tpu.matmul %17, %18, %cst_16 {dimension_numbers = #tpu.dot_dimension_numbers<[1], [0], [0], [1], [0, 0, 1, 1], [], []>} : vector<8x128xbf16>, vector<128x512xbf16>, vector<8x512xf32> -> vector<8x512xf32>
    %20 = arith.addf %16, %19 : vector<8x512xf32>
    %21 = vector.extract_strided_slice %20 {offsets = [0, 0], sizes = [8, 128], strides = [1, 1]} : vector<8x512xf32> to vector<8x128xf32>
    %22 = arith.negf %21 : vector<8x128xf32>
    %23 = math.exp %22 : vector<8x128xf32>
    %cst_17 = arith.constant 1.000000e+00 : f32
    %24 = vector.broadcast %cst_17 : f32 to vector<8x128xf32>
    %25 = arith.addf %24, %23 : vector<8x128xf32>
    %26 = arith.divf %24, %25 : vector<8x128xf32>
    %27 = vector.extract_strided_slice %20 {offsets = [0, 128], sizes = [8, 128], strides = [1, 1]} : vector<8x512xf32> to vector<8x128xf32>
    %28 = arith.negf %27 : vector<8x128xf32>
    %29 = math.exp %28 : vector<8x128xf32>
    %cst_18 = arith.constant 1.000000e+00 : f32
    %30 = vector.broadcast %cst_18 : f32 to vector<8x128xf32>
    %31 = arith.addf %30, %29 : vector<8x128xf32>
    %32 = arith.divf %30, %31 : vector<8x128xf32>
    %33 = vector.extract_strided_slice %20 {offsets = [0, 256], sizes = [8, 128], strides = [1, 1]} : vector<8x512xf32> to vector<8x128xf32>
    %34 = math.tanh %33 : vector<8x128xf32>
    %35 = vector.extract_strided_slice %20 {offsets = [0, 384], sizes = [8, 128], strides = [1, 1]} : vector<8x512xf32> to vector<8x128xf32>
    %36 = arith.negf %35 : vector<8x128xf32>
    %37 = math.exp %36 : vector<8x128xf32>
    %cst_19 = arith.constant 1.000000e+00 : f32
    %38 = vector.broadcast %cst_19 : f32 to vector<8x128xf32>
    %39 = arith.addf %38, %37 : vector<8x128xf32>
    %40 = arith.divf %38, %39 : vector<8x128xf32>
    %41 = arith.mulf %32, %12 : vector<8x128xf32>
    %42 = arith.mulf %26, %34 : vector<8x128xf32>
    %43 = arith.addf %41, %42 : vector<8x128xf32>
    %44 = math.tanh %43 : vector<8x128xf32>
    %45 = arith.mulf %40, %44 : vector<8x128xf32>
    %46 = arith.addi %10, %c0_i32_12 : i32
    %c10_i32 = arith.constant 10 : i32
    %47 = arith.cmpi slt, %46, %c10_i32 : i32
    %48 = arith.extui %47 : i1 to i32
    %49 = arith.sitofp %48 : i32 to f32
    %50 = vector.broadcast %49 : f32 to vector<8x128xf32>
    %51 = arith.mulf %50, %45 : vector<8x128xf32>
    %cst_20 = arith.constant 1.000000e+00 : f32
    %52 = arith.subf %cst_20, %49 : f32
    %53 = vector.broadcast %52 : f32 to vector<8x128xf32>
    %54 = arith.mulf %53, %11 : vector<8x128xf32>
    %55 = arith.addf %51, %54 : vector<8x128xf32>
    %56 = vector.broadcast %49 : f32 to vector<8x128xf32>
    %57 = arith.mulf %56, %43 : vector<8x128xf32>
    %cst_21 = arith.constant 1.000000e+00 : f32
    %58 = arith.subf %cst_21, %49 : f32
    %59 = vector.broadcast %58 : f32 to vector<8x128xf32>
    %60 = arith.mulf %59, %12 : vector<8x128xf32>
    %61 = arith.addf %57, %60 : vector<8x128xf32>
    %c1_i32 = arith.constant 1 : i32
    %c8_i32_22 = arith.constant 8 : i32
    %62 = arith.muli %c1_i32, %c8_i32_22 : i32
    %63 = tpu.assume_multiple %62, 8 : i32
    %64 = arith.index_cast %63 : i32 to index
    %c0_23 = arith.constant 0 : index
    %65 = vector.load %arg10[%64, %c0_23] : memref<32x512xf32, #tpu.memory_space<vmem>>, vector<8x512xf32>
    %66 = arith.truncf %55 : vector<8x128xf32> to vector<8x128xbf16>
    %c0_24 = arith.constant 0 : index
    %c0_25 = arith.constant 0 : index
    %67 = vector.load %arg3[%c0_24, %c0_25] : memref<128x512xbf16, #tpu.memory_space<vmem>>, vector<128x512xbf16>
    %cst_26 = arith.constant dense<0.000000e+00> : vector<8x512xf32>
    %68 = tpu.matmul %66, %67, %cst_26 {dimension_numbers = #tpu.dot_dimension_numbers<[1], [0], [0], [1], [0, 0, 1, 1], [], []>} : vector<8x128xbf16>, vector<128x512xbf16>, vector<8x512xf32> -> vector<8x512xf32>
    %69 = arith.addf %65, %68 : vector<8x512xf32>
    %70 = vector.extract_strided_slice %69 {offsets = [0, 0], sizes = [8, 128], strides = [1, 1]} : vector<8x512xf32> to vector<8x128xf32>
    %71 = arith.negf %70 : vector<8x128xf32>
    %72 = math.exp %71 : vector<8x128xf32>
    %cst_27 = arith.constant 1.000000e+00 : f32
    %73 = vector.broadcast %cst_27 : f32 to vector<8x128xf32>
    %74 = arith.addf %73, %72 : vector<8x128xf32>
    %75 = arith.divf %73, %74 : vector<8x128xf32>
    %76 = vector.extract_strided_slice %69 {offsets = [0, 128], sizes = [8, 128], strides = [1, 1]} : vector<8x512xf32> to vector<8x128xf32>
    %77 = arith.negf %76 : vector<8x128xf32>
    %78 = math.exp %77 : vector<8x128xf32>
    %cst_28 = arith.constant 1.000000e+00 : f32
    %79 = vector.broadcast %cst_28 : f32 to vector<8x128xf32>
    %80 = arith.addf %79, %78 : vector<8x128xf32>
    %81 = arith.divf %79, %80 : vector<8x128xf32>
    %82 = vector.extract_strided_slice %69 {offsets = [0, 256], sizes = [8, 128], strides = [1, 1]} : vector<8x512xf32> to vector<8x128xf32>
    %83 = math.tanh %82 : vector<8x128xf32>
    %84 = vector.extract_strided_slice %69 {offsets = [0, 384], sizes = [8, 128], strides = [1, 1]} : vector<8x512xf32> to vector<8x128xf32>
    %85 = arith.negf %84 : vector<8x128xf32>
    %86 = math.exp %85 : vector<8x128xf32>
    %cst_29 = arith.constant 1.000000e+00 : f32
    %87 = vector.broadcast %cst_29 : f32 to vector<8x128xf32>
    %88 = arith.addf %87, %86 : vector<8x128xf32>
    %89 = arith.divf %87, %88 : vector<8x128xf32>
    %90 = arith.mulf %81, %61 : vector<8x128xf32>
    %91 = arith.mulf %75, %83 : vector<8x128xf32>
    %92 = arith.addf %90, %91 : vector<8x128xf32>
    %93 = math.tanh %92 : vector<8x128xf32>
    %94 = arith.mulf %89, %93 : vector<8x128xf32>
    %95 = arith.addi %10, %c1_i32 : i32
    %c10_i32_30 = arith.constant 10 : i32
    %96 = arith.cmpi slt, %95, %c10_i32_30 : i32
    %97 = arith.extui %96 : i1 to i32
    %98 = arith.sitofp %97 : i32 to f32
    %99 = vector.broadcast %98 : f32 to vector<8x128xf32>
    %100 = arith.mulf %99, %94 : vector<8x128xf32>
    %cst_31 = arith.constant 1.000000e+00 : f32
    %101 = arith.subf %cst_31, %98 : f32
    %102 = vector.broadcast %101 : f32 to vector<8x128xf32>
    %103 = arith.mulf %102, %55 : vector<8x128xf32>
    %104 = arith.addf %100, %103 : vector<8x128xf32>
    %105 = vector.broadcast %98 : f32 to vector<8x128xf32>
    %106 = arith.mulf %105, %92 : vector<8x128xf32>
    %cst_32 = arith.constant 1.000000e+00 : f32
    %107 = arith.subf %cst_32, %98 : f32
    %108 = vector.broadcast %107 : f32 to vector<8x128xf32>
    %109 = arith.mulf %108, %61 : vector<8x128xf32>
    %110 = arith.addf %106, %109 : vector<8x128xf32>
    %c2_i32 = arith.constant 2 : i32
    %c8_i32_33 = arith.constant 8 : i32
    %111 = arith.muli %c2_i32, %c8_i32_33 : i32
    %112 = tpu.assume_multiple %111, 8 : i32
    %113 = arith.index_cast %112 : i32 to index
    %c0_34 = arith.constant 0 : index
    %114 = vector.load %arg10[%113, %c0_34] : memref<32x512xf32, #tpu.memory_space<vmem>>, vector<8x512xf32>
    %115 = arith.truncf %104 : vector<8x128xf32> to vector<8x128xbf16>
    %c0_35 = arith.constant 0 : index
    %c0_36 = arith.constant 0 : index
    %116 = vector.load %arg3[%c0_35, %c0_36] : memref<128x512xbf16, #tpu.memory_space<vmem>>, vector<128x512xbf16>
    %cst_37 = arith.constant dense<0.000000e+00> : vector<8x512xf32>
    %117 = tpu.matmul %115, %116, %cst_37 {dimension_numbers = #tpu.dot_dimension_numbers<[1], [0], [0], [1], [0, 0, 1, 1], [], []>} : vector<8x128xbf16>, vector<128x512xbf16>, vector<8x512xf32> -> vector<8x512xf32>
    %118 = arith.addf %114, %117 : vector<8x512xf32>
    %119 = vector.extract_strided_slice %118 {offsets = [0, 0], sizes = [8, 128], strides = [1, 1]} : vector<8x512xf32> to vector<8x128xf32>
    %120 = arith.negf %119 : vector<8x128xf32>
    %121 = math.exp %120 : vector<8x128xf32>
    %cst_38 = arith.constant 1.000000e+00 : f32
    %122 = vector.broadcast %cst_38 : f32 to vector<8x128xf32>
    %123 = arith.addf %122, %121 : vector<8x128xf32>
    %124 = arith.divf %122, %123 : vector<8x128xf32>
    %125 = vector.extract_strided_slice %118 {offsets = [0, 128], sizes = [8, 128], strides = [1, 1]} : vector<8x512xf32> to vector<8x128xf32>
    %126 = arith.negf %125 : vector<8x128xf32>
    %127 = math.exp %126 : vector<8x128xf32>
    %cst_39 = arith.constant 1.000000e+00 : f32
    %128 = vector.broadcast %cst_39 : f32 to vector<8x128xf32>
    %129 = arith.addf %128, %127 : vector<8x128xf32>
    %130 = arith.divf %128, %129 : vector<8x128xf32>
    %131 = vector.extract_strided_slice %118 {offsets = [0, 256], sizes = [8, 128], strides = [1, 1]} : vector<8x512xf32> to vector<8x128xf32>
    %132 = math.tanh %131 : vector<8x128xf32>
    %133 = vector.extract_strided_slice %118 {offsets = [0, 384], sizes = [8, 128], strides = [1, 1]} : vector<8x512xf32> to vector<8x128xf32>
    %134 = arith.negf %133 : vector<8x128xf32>
    %135 = math.exp %134 : vector<8x128xf32>
    %cst_40 = arith.constant 1.000000e+00 : f32
    %136 = vector.broadcast %cst_40 : f32 to vector<8x128xf32>
    %137 = arith.addf %136, %135 : vector<8x128xf32>
    %138 = arith.divf %136, %137 : vector<8x128xf32>
    %139 = arith.mulf %130, %110 : vector<8x128xf32>
    %140 = arith.mulf %124, %132 : vector<8x128xf32>
    %141 = arith.addf %139, %140 : vector<8x128xf32>
    %142 = math.tanh %141 : vector<8x128xf32>
    %143 = arith.mulf %138, %142 : vector<8x128xf32>
    %144 = arith.addi %10, %c2_i32 : i32
    %c10_i32_41 = arith.constant 10 : i32
    %145 = arith.cmpi slt, %144, %c10_i32_41 : i32
    %146 = arith.extui %145 : i1 to i32
    %147 = arith.sitofp %146 : i32 to f32
    %148 = vector.broadcast %147 : f32 to vector<8x128xf32>
    %149 = arith.mulf %148, %143 : vector<8x128xf32>
    %cst_42 = arith.constant 1.000000e+00 : f32
    %150 = arith.subf %cst_42, %147 : f32
    %151 = vector.broadcast %150 : f32 to vector<8x128xf32>
    %152 = arith.mulf %151, %104 : vector<8x128xf32>
    %153 = arith.addf %149, %152 : vector<8x128xf32>
    %154 = vector.broadcast %147 : f32 to vector<8x128xf32>
    %155 = arith.mulf %154, %141 : vector<8x128xf32>
    %cst_43 = arith.constant 1.000000e+00 : f32
    %156 = arith.subf %cst_43, %147 : f32
    %157 = vector.broadcast %156 : f32 to vector<8x128xf32>
    %158 = arith.mulf %157, %110 : vector<8x128xf32>
    %159 = arith.addf %155, %158 : vector<8x128xf32>
    %c3_i32 = arith.constant 3 : i32
    %c8_i32_44 = arith.constant 8 : i32
    %160 = arith.muli %c3_i32, %c8_i32_44 : i32
    %161 = tpu.assume_multiple %160, 8 : i32
    %162 = arith.index_cast %161 : i32 to index
    %c0_45 = arith.constant 0 : index
    %163 = vector.load %arg10[%162, %c0_45] : memref<32x512xf32, #tpu.memory_space<vmem>>, vector<8x512xf32>
    %164 = arith.truncf %153 : vector<8x128xf32> to vector<8x128xbf16>
    %c0_46 = arith.constant 0 : index
    %c0_47 = arith.constant 0 : index
    %165 = vector.load %arg3[%c0_46, %c0_47] : memref<128x512xbf16, #tpu.memory_space<vmem>>, vector<128x512xbf16>
    %cst_48 = arith.constant dense<0.000000e+00> : vector<8x512xf32>
    %166 = tpu.matmul %164, %165, %cst_48 {dimension_numbers = #tpu.dot_dimension_numbers<[1], [0], [0], [1], [0, 0, 1, 1], [], []>} : vector<8x128xbf16>, vector<128x512xbf16>, vector<8x512xf32> -> vector<8x512xf32>
    %167 = arith.addf %163, %166 : vector<8x512xf32>
    %168 = vector.extract_strided_slice %167 {offsets = [0, 0], sizes = [8, 128], strides = [1, 1]} : vector<8x512xf32> to vector<8x128xf32>
    %169 = arith.negf %168 : vector<8x128xf32>
    %170 = math.exp %169 : vector<8x128xf32>
    %cst_49 = arith.constant 1.000000e+00 : f32
    %171 = vector.broadcast %cst_49 : f32 to vector<8x128xf32>
    %172 = arith.addf %171, %170 : vector<8x128xf32>
    %173 = arith.divf %171, %172 : vector<8x128xf32>
    %174 = vector.extract_strided_slice %167 {offsets = [0, 128], sizes = [8, 128], strides = [1, 1]} : vector<8x512xf32> to vector<8x128xf32>
    %175 = arith.negf %174 : vector<8x128xf32>
    %176 = math.exp %175 : vector<8x128xf32>
    %cst_50 = arith.constant 1.000000e+00 : f32
    %177 = vector.broadcast %cst_50 : f32 to vector<8x128xf32>
    %178 = arith.addf %177, %176 : vector<8x128xf32>
    %179 = arith.divf %177, %178 : vector<8x128xf32>
    %180 = vector.extract_strided_slice %167 {offsets = [0, 256], sizes = [8, 128], strides = [1, 1]} : vector<8x512xf32> to vector<8x128xf32>
    %181 = math.tanh %180 : vector<8x128xf32>
    %182 = vector.extract_strided_slice %167 {offsets = [0, 384], sizes = [8, 128], strides = [1, 1]} : vector<8x512xf32> to vector<8x128xf32>
    %183 = arith.negf %182 : vector<8x128xf32>
    %184 = math.exp %183 : vector<8x128xf32>
    %cst_51 = arith.constant 1.000000e+00 : f32
    %185 = vector.broadcast %cst_51 : f32 to vector<8x128xf32>
    %186 = arith.addf %185, %184 : vector<8x128xf32>
    %187 = arith.divf %185, %186 : vector<8x128xf32>
    %188 = arith.mulf %179, %159 : vector<8x128xf32>
    %189 = arith.mulf %173, %181 : vector<8x128xf32>
    %190 = arith.addf %188, %189 : vector<8x128xf32>
    %191 = math.tanh %190 : vector<8x128xf32>
    %192 = arith.mulf %187, %191 : vector<8x128xf32>
    %193 = arith.addi %10, %c3_i32 : i32
    %c10_i32_52 = arith.constant 10 : i32
    %194 = arith.cmpi slt, %193, %c10_i32_52 : i32
    %195 = arith.extui %194 : i1 to i32
    %196 = arith.sitofp %195 : i32 to f32
    %197 = vector.broadcast %196 : f32 to vector<8x128xf32>
    %198 = arith.mulf %197, %192 : vector<8x128xf32>
    %cst_53 = arith.constant 1.000000e+00 : f32
    %199 = arith.subf %cst_53, %196 : f32
    %200 = vector.broadcast %199 : f32 to vector<8x128xf32>
    %201 = arith.mulf %200, %153 : vector<8x128xf32>
    %202 = arith.addf %198, %201 : vector<8x128xf32>
    %203 = vector.broadcast %196 : f32 to vector<8x128xf32>
    %204 = arith.mulf %203, %190 : vector<8x128xf32>
    %cst_54 = arith.constant 1.000000e+00 : f32
    %205 = arith.subf %cst_54, %196 : f32
    %206 = vector.broadcast %205 : f32 to vector<8x128xf32>
    %207 = arith.mulf %206, %159 : vector<8x128xf32>
    %208 = arith.addf %204, %207 : vector<8x128xf32>
    %c4_i32_55 = arith.constant 4 : i32
    %c0_56 = arith.constant 0 : index
    %c0_57 = arith.constant 0 : index
    %209 = vector.load %arg8[%c0_56, %c0_57] : memref<8x128xf32, #tpu.memory_space<vmem>>, vector<8x128xf32>
    tpu.vector_store %arg8[%c0_56, %c0_57], %202 {strides = array<i32>} : memref<8x128xf32, #tpu.memory_space<vmem>>, vector<8x128xf32>,
    %c0_58 = arith.constant 0 : index
    %c0_59 = arith.constant 0 : index
    %210 = vector.load %arg9[%c0_58, %c0_59] : memref<8x128xf32, #tpu.memory_space<vmem>>, vector<8x128xf32>
    tpu.vector_store %arg9[%c0_58, %c0_59], %208 {strides = array<i32>} : memref<8x128xf32, #tpu.memory_space<vmem>>, vector<8x128xf32>,
    %c2_i32_60 = arith.constant 2 : i32
    %211 = arith.cmpi eq, %arg0, %c2_i32_60 : i32
    %212 = arith.extui %211 : i1 to i32
    %c0_i32_61 = arith.constant 0 : i32
    %213 = arith.cmpi ne, %212, %c0_i32_61 : i32
    scf.if %213 {
      %214 = arith.truncf %202 : vector<8x128xf32> to vector<8x128xbf16>
      %c0_62 = arith.constant 0 : index
      %c0_63 = arith.constant 0 : index
      %215 = vector.load %arg5[%c0_62, %c0_63] : memref<128x128xbf16, #tpu.memory_space<vmem>>, vector<128x128xbf16>
      %cst_64 = arith.constant dense<0.000000e+00> : vector<8x128xf32>
      %216 = tpu.matmul %214, %215, %cst_64 {dimension_numbers = #tpu.dot_dimension_numbers<[1], [0], [0], [1], [0, 0, 1, 1], [], []>} : vector<8x128xbf16>, vector<128x128xbf16>, vector<8x128xf32> -> vector<8x128xf32>
      %c0_65 = arith.constant 0 : index
      %c0_66 = arith.constant 0 : index
      %217 = vector.load %arg6[%c0_65, %c0_66] : memref<1x128xf32, #tpu.memory_space<vmem>>, vector<1x128xf32>
      %218 = vector.broadcast %217 : vector<1x128xf32> to vector<8x128xf32>
      %219 = arith.addf %216, %218 : vector<8x128xf32>
      %c0_67 = arith.constant 0 : index
      %c0_68 = arith.constant 0 : index
      %220 = vector.load %arg7[%c0_67, %c0_68] : memref<8x128xf32, #tpu.memory_space<vmem>>, vector<8x128xf32>
      tpu.vector_store %arg7[%c0_67, %c0_68], %219 {strides = array<i32>} : memref<8x128xf32, #tpu.memory_space<vmem>>, vector<8x128xf32>,
    } else {
    }
    return
  }
  func.func @transform_0(%arg0: i32) -> (i32, i32) {
    %c0_i32 = arith.constant 0 : i32
    %c0_i32_0 = arith.constant 0 : i32
    return %arg0, %c0_i32 : i32, i32
  }
  func.func @transform_1(%arg0: i32) -> (i32, i32) {
    %c0_i32 = arith.constant 0 : i32
    %c0_i32_0 = arith.constant 0 : i32
    %c0_i32_1 = arith.constant 0 : i32
    return %c0_i32, %c0_i32_0 : i32, i32
  }
  func.func @transform_2(%arg0: i32) -> (i32, i32) {
    %c0_i32 = arith.constant 0 : i32
    %c0_i32_0 = arith.constant 0 : i32
    %c0_i32_1 = arith.constant 0 : i32
    return %c0_i32, %c0_i32_0 : i32, i32
  }
  func.func @transform_3(%arg0: i32) -> (i32, i32) {
    %c0_i32 = arith.constant 0 : i32
    %c0_i32_0 = arith.constant 0 : i32
    %c0_i32_1 = arith.constant 0 : i32
    return %c0_i32, %c0_i32_0 : i32, i32
  }
  func.func @transform_4(%arg0: i32) -> (i32, i32) {
    %c0_i32 = arith.constant 0 : i32
    %c0_i32_0 = arith.constant 0 : i32
    %c0_i32_1 = arith.constant 0 : i32
    return %c0_i32, %c0_i32_0 : i32, i32
  }
  func.func @transform_5(%arg0: i32) -> (i32, i32) {
    %c0_i32 = arith.constant 0 : i32
    %c0_i32_0 = arith.constant 0 : i32
    %c0_i32_1 = arith.constant 0 : i32
    return %c0_i32, %c0_i32_0 : i32, i32
  }
  func.func @transform_6(%arg0: i32) -> (i32, i32) {
    %c0_i32 = arith.constant 0 : i32
    %c0_i32_0 = arith.constant 0 : i32
    %c0_i32_1 = arith.constant 0 : i32
    return %c0_i32, %c0_i32_0 : i32, i32
  }
}

</mosaic_0001>

<bundles_post_ra>
// kernel: tpu_custom_call.1
= control target key start
LH: loop header
LB: loop body
LE: loop exit
PB: predicated region body
PF: predicated region fallthrough
CT: control target
= control target key end

     0   :  { %11 = vsyncpa [#allocation6], 0  ;;  %s2735_s0 = inlined_call_operand.hbm [shape: bf16[96,128], index: 0, kind: input, shape index: {}]   ;;  %s2736_s1 = inlined_call_operand.hbm [shape: bf16[128,512], index: 1, kind: input, shape index: {}]   ;;  %s2737_s2 = inlined_call_operand.hbm [shape: bf16[128,512], index: 2, kind: input, shape index: {}]   ;;  %s2738_s3 = inlined_call_operand.vmem [shape: f32[1,512], index: 3, kind: input, shape index: {}]   ;;  %s2739_s4 = inlined_call_operand.hbm [shape: bf16[128,128], index: 4, kind: input, shape index: {}]   ;;  %s2740_s5 = inlined_call_operand.vmem [shape: f32[1,128], index: 5, kind: input, shape index: {}]   ;;  %s2741_s6 = inlined_call_operand.hbm [shape: f32[8,128], index: 6, kind: output, shape index: {}]  }
   0x1   :  { %13 = vsyncpa [#allocation6 + $0x1], 0 }
   0x2   :  { %14 = vsyncpa [#allocation9], 0 }
   0x3   :  { %15 = vsyncpa [#allocation12], 0 }
   0x4   :  { %16 = vsyncpa [#allocation7], 0  ;;  %s2217_s21 = smov 0   ;;  %s2219_s22 = smov 0  }
   0x5   :  { %s2221_s23 = smov 0   ;;  %s2223_s24 = smov 0  }
   0x6 LB: > { %s2236_s25 = sadd.s32 4294967295, %s2167_s24   ;;  %p42_p0 = scmp.ne.s32.totalorder %s2159_s22, %s2155_s21  ;;  %s2167_s24 = sphi %s2223_s24, %s2777_s24   ;;  %s2163_s23 = sphi %s2221_s23, %s2776_s23   ;;  %s2159_s22 = sphi %s2219_s22, %s2775_s22   ;;  %s2155_s21 = sphi %s2217_s21, %s2774_s21  }
   0x7   : > { %p2742_p1 = scmp.eq.s32.totalorder %s2236_s25, 0  ;;  %p1589_p2 = scmp.ge.s32.totalorder %s2167_s24, 1 }
   0x8   : > { %p179_p3 = scmp.lt.s32.totalorder %s2167_s24, 4  ;;  %s2169_s28 = smov [#allocation8]  }
   0x9   : > { %p2245_p5 = por %p2742_p1, %p42_p0  ;;  %s191_s29 = sshll.u32 %s2169_s28, 4  ;;  %s2253_s29 = int_to_ptr.vmem [resolvable:$true] %s191_s29 }
   0xa   : > { %p2249_p6 = pnand %p1589_p2, %p179_p3  ;;  %s2170_s7 = smov [#allocation10]  }
   0xb   : > { %s2747_s26 = scalar_select %p2245_p5, 1, 0 }
   0xc   : > { %s2748_s27 = scalar_select %p2249_p6, 1, 0 }
   0xd   : > { %p1744_p7 = pneg %p2249_p6  ;;  %s204_s8 = sshll.u32 %s2170_s7, 4  ;;  %s2263_s8 = int_to_ptr.vmem [resolvable:$true] %s204_s8 }
   0xe   : > { %s2171_s9 = smov [#allocation11]   ;;  %s1981_s13 = scalar_lea.hbm %s2736_s1, 4096 }
   0xf   : > { %p2259_p8 = pnand %p1744_p7, %p2742_p1  ;;  %s2265_s10 = sshll.u32 %s2171_s9, 4  ;;  %s221_s10 = int_to_ptr.vmem [resolvable:$true] %s2265_s10 }
  0x10   : > { %p1982_p9 = scmp.ne.s32.totalorder %s2736_s1, %s1981_s13  ;;  %p1988_p13 = scmp.lt.u32.totalorder %s1981_s13, %s2736_s1 }
  0x11   : > { %p2275_p10 = pneg %p2259_p8 }
  0x13   : > { %p1984_p11 = pnand %p2275_p10, %p1982_p9 }
  0x15   : > { %p1985_p12 = pneg %p1984_p11 }
  0x17   : > { %p1990_p0 = pnand %p1988_p13, %p1985_p12 }
  0x19   : > { %1993 = shalt.err (!%p1990_p0)
}
  0x1a   : > { %s1994_s19 = scalar_lea.vmem %s2253_s29, 4096  ;;  %p2002_p4 = scmp.lt.s32.totalorder %s2253_s29, %s2253_s29 }
  0x1b   : > { %p1995_p2 = scmp.ne.s32.totalorder %s2253_s29, %s1994_s19  ;;  %p2003_p1 = scmp.lt.s32.totalorder %s1994_s19, %s1994_s19 }
  0x1d   : > { %p1997_p3 = pnand %p1995_p2, %p2275_p10  ;;  %p2004_p9 = por %p2003_p1, %p2002_p4 }
  0x1f   : > { %p1998_p7 = pneg %p1997_p3 }
  0x21   : > { %p2005_p11 = pnand %p2004_p9, %p1998_p7 }
  0x23   : > { %2008 = shalt.err (!%p2005_p11)
}
  0x24   : > { %s2172_s20 = smov 256   ;;  %s2173_s21 = smov 16  }
  0x25   : > { %1747 = dma.hbm_to_vmem [thread:$0]  (!%p2259_p8), %s2736_s1, 4096, %s2253_s29, [#allocation9], %s2172_s20, %s2172_s20, %s2173_s21  }
  0x26   : > { %s2009_s12 = scalar_lea.hbm %s2737_s2, 4096 }
  0x27   : > { %p2010_p1 = scmp.ne.s32.totalorder %s2737_s2, %s2009_s12  ;;  %p2016_p13 = scmp.lt.u32.totalorder %s2009_s12, %s2737_s2 }
  0x29   : > { %p2012_p4 = pnand %p2010_p1, %p2275_p10 }
  0x2b   : > { %p2013_p12 = pneg %p2012_p4 }
  0x2d   : > { %p2018_p0 = pnand %p2016_p13, %p2013_p12 }
  0x2f   : > { %2021 = shalt.err (!%p2018_p0)
}
  0x30   : > { %s2022_s29 = scalar_lea.vmem %s2263_s8, 4096  ;;  %p2030_p9 = scmp.lt.s32.totalorder %s2263_s8, %s2263_s8 }
  0x31   : > { %p2023_p2 = scmp.ne.s32.totalorder %s2263_s8, %s2022_s29  ;;  %p2031_p11 = scmp.lt.s32.totalorder %s2022_s29, %s2022_s29 }
  0x33   : > { %p2025_p3 = pnand %p2023_p2, %p2275_p10  ;;  %p2032_p1 = por %p2031_p11, %p2030_p9 }
  0x35   : > { %p2026_p7 = pneg %p2025_p3 }
  0x37   : > { %p2033_p4 = pnand %p2032_p1, %p2026_p7 }
  0x39   : > { %2036 = shalt.err (!%p2033_p4)
}
  0x3a   : > { %1750 = dma.hbm_to_vmem [thread:$0]  (!%p2259_p8), %s2737_s2, 4096, %s2263_s8, [#allocation9], %s2172_s20, %s2172_s20, %s2173_s21  }
  0x3b   : > { %s2037_s9 = scalar_lea.hbm %s2739_s4, 1024 }
  0x3c   : > { %p2038_p12 = scmp.ne.s32.totalorder %s2739_s4, %s2037_s9  ;;  %p2044_p2 = scmp.lt.u32.totalorder %s2037_s9, %s2739_s4 }
  0x3e   : > { %p2040_p13 = pnand %p2038_p12, %p2275_p10 }
  0x40   : > { %p2041_p0 = pneg %p2040_p13 }
  0x42   : > { %p2046_p3 = pnand %p2044_p2, %p2041_p0 }
  0x44   : > { %2049 = shalt.err (!%p2046_p3)
}
  0x45   : > { %s2050_s15 = scalar_lea.vmem %s221_s10, 1024  ;;  %p2058_p1 = scmp.lt.s32.totalorder %s221_s10, %s221_s10 }
  0x46   : > { %p2051_p7 = scmp.ne.s32.totalorder %s221_s10, %s2050_s15  ;;  %p2059_p4 = scmp.lt.s32.totalorder %s2050_s15, %s2050_s15 }
  0x48   : > { %p2053_p9 = pnand %p2051_p7, %p2275_p10  ;;  %p2060_p5 = por %p2059_p4, %p2058_p1 }
  0x4a   : > { %p2054_p11 = pneg %p2053_p9 }
  0x4c   : > { %p2061_p6 = pnand %p2060_p5, %p2054_p11 }
  0x4e   : > { %2064 = shalt.err (!%p2061_p6)
}
  0x4f   : > { %s2174_s8 = smov 64   ;;  %s2175_s16 = smov 4  }
  0x50   : > { %1753 = dma.hbm_to_vmem [thread:$0]  (!%p2259_p8), %s2739_s4, 1024, %s221_s10, [#allocation12], %s2174_s8, %s2174_s8, %s2175_s16  }
  0x51   : > { %s2342_s17 = sadd.s32 1, %s2167_s24   ;;  %s29_s18 = sadd.s32 1, %s2163_s23 }
  0x52   : > { %s26_s29 = ssub.s32 %s2167_s24, %s2342_s17  ;;  %p36_p6 = scmp.ne.s32.totalorder %s2163_s23, %s2159_s22 }
  0x53   : > { %p27_p5 = scmp.eq.s32.totalorder %s26_s29, 0  ;;  %p37_p10 = scmp.eq.s32.totalorder %s2167_s24, 0 }
  0x54   : > { %p1761_p12 = scmp.lt.s32.totalorder %s2167_s24, 3  ;;  %s237_s30 = sand.u32 1, %s2163_s23  }
  0x55   : > { %s2352_s19 = scalar_select %p27_p5, %s2163_s23, %s29_s18  }
  0x56   : > { %p38_p13 = por %p37_p10, %p36_p6  ;;  %s1594_s28 = sshll.u32 %s237_s30, 4 }
  0x57   : > { %s1696_s7 = sshll.u32 %s2167_s24, 8  ;;  %s241_s10 = scalar_lea.vmem [#allocation5], %s1594_s28 }
  0x58   : > { %s2359_s12 = scalar_lea.hbm %s2735_s0, %s1696_s7  ;;  %s248_s13 = sshll.u32 %s241_s10, 4  ;;  %s2361_s13 = int_to_ptr.vmem [resolvable:$true] %s248_s13 }
  0x59   : > { %p2363_p8 = pnand %p1761_p12, %p38_p13  ;;  %s2367_s24 = scalar_lea.sflag [#allocation6], %s237_s30 }
  0x5a   : > { %s2065_s15 = scalar_lea.hbm %s2359_s12, 256  ;;  %s2070_s29 = scalar_lea.hbm %s2735_s0, 768 }
  0x5b   : > { %p2066_p0 = scmp.ne.s32.totalorder %s2359_s12, %s2065_s15  ;;  %p2067_p2 = pneg %p2363_p8 }
  0x5c   : > { %p2071_p9 = scmp.lt.u32.totalorder %s2359_s12, %s2735_s0  ;;  %p2072_p11 = scmp.lt.u32.totalorder %s2070_s29, %s2065_s15 }
  0x5d   : > { %p2068_p3 = pnand %p2067_p2, %p2066_p0  ;;  %p2074_p4 = scmp.lt.u32.totalorder %s2065_s15, %s2359_s12 }
  0x5e   : > { %p2073_p1 = por %p2072_p11, %p2071_p9 }
  0x5f   : > { %p2069_p7 = pneg %p2068_p3 }
  0x60   : > { %p2075_p5 = por %p2074_p4, %p2073_p1 }
  0x62   : > { %p2076_p6 = pnand %p2075_p5, %p2069_p7 }
  0x64   : > { %2079 = shalt.err (!%p2076_p6)
}
  0x65   : > { %s2080_s30 = scalar_lea.vmem %s2361_s13, 256  ;;  %s2176_s7 = smov [#allocation5]  }
  0x66   : > { %p2081_p10 = scmp.ne.s32.totalorder %s2361_s13, %s2080_s30  ;;  %s2085_s9 = sshll.u32 %s2176_s7, 4  ;;  %s2086_s9 = int_to_ptr.vmem [resolvable:$false] %s2085_s9 }
  0x67   : > { %s2087_s11 = scalar_lea.vmem %s2086_s9, 512  ;;  %p2088_p0 = scmp.lt.s32.totalorder %s2361_s13, %s2086_s9 }
  0x68   : > { %p2083_p12 = pnand %p2081_p10, %p2067_p2  ;;  %p2089_p3 = scmp.lt.s32.totalorder %s2087_s11, %s2080_s30 }
  0x6a   : > { %p2084_p13 = pneg %p2083_p12  ;;  %p2090_p9 = por %p2089_p3, %p2088_p0 }
  0x6c   : > { %p2091_p11 = pnand %p2090_p9, %p2084_p13 }
  0x6e   : > { %2094 = shalt.err (!%p2091_p11)
}
  0x6f   : > { %1757 = dma.hbm_to_vmem [thread:$0]  (!%p2363_p8), %s2359_s12, 256, %s2361_s13, %s2367_s24, %s2174_s8, %s2174_s8, %s2175_s16  }
  0x70   : > { %p2752_p2 = scmp.ne.s32.totalorder %s2748_s27, 0 }
  0x72   : > { %260 = sbr.rel (%p2752_p2) target bundleno = 1502 (0x5de), region = 44 }
  0x79   : > { %s262_s10 = sand.u32 1, %s2159_s22   ;;  %p2753_p7 = scmp.ne.s32.totalorder %s2747_s26, 0 }
  0x7a   : > { %s2401_s15 = sshll.u32 %s262_s10, 4  ;;  %s263_s20 = scalar_lea.sflag [#allocation6], %s262_s10 }
  0x7b   : > { %s266_s21 = scalar_lea.vmem [#allocation5], %s2401_s15 }
  0x7c   : > { %2138 = dma.done.wait (%p2753_p7), %s263_s20, 256  }
  0x7d   : > { %2140 = vsyncadd (%p2753_p7), %s263_s20, 4294967040  ;;  %p2754_p1 = scmp.eq.s32.totalorder %s2236_s25, 0 }
  0x7f   : > { %2142 = dma.done.wait (%p2754_p1), [#allocation9], 8192   ;;  %p2755_p8 = pmov %p2754_p1 }
  0x80   : > { %p2756_p4 = pmov %p2754_p1 }
  0x81   : > { %2144 = vsyncadd (%p2755_p8), [#allocation9], 4294959104 }
  0x82   : > { %2146 = dma.done.wait (%p2756_p4), [#allocation12], 1024   ;;  %p2757_p5 = pmov %p2754_p1 }
  0x83   : > { %p2758_p6 = scmp.ne.s32.totalorder %s2236_s25, 0 }
  0x84   : > { %2148 = vsyncadd (%p2757_p5), [#allocation12], 4294966272  ;;  %v2177_v0 = vmov (!%p2758_p6), 0.0  }
  0x85   : > { %307 = sbr.rel (%p2758_p6) target bundleno = 140 (0x8c), region = 64  ;;  %308 = vst [vmem:[#allocation2] sm:$0xff] (!%p2758_p6), %v2177_v0  ;;  %309 = vst [vmem:[#allocation3] sm:$0xff] (!%p2758_p6), %v2177_v0 }
  0x8c PF: > { %v1811_v1 = vld [vmem:[#allocation8 + $0x4] ss:$16 sps:$4 sm:$0xff]   ;;  %v1813_v2 = vld [vmem:[#allocation8 + $0xc] ss:$16 sps:$4 sm:$0xff]   ;;  %v2745_v3 = vmov 0   ;;  %s2592_s8 = sshll.u32 %s2236_s25, 2 }
  0x8d   : > { %572 = vmatprep.mubr.bf16.mxu0 %v2745_v3  ;;  %625 = vmatprep.mubr.bf16.mxu1 %v2745_v3  ;;  %v1815_v4 = vld [vmem:[#allocation8] ss:$16 sps:$4 sm:$0xff]   ;;  %v1816_v5 = vld [vmem:[#allocation8 + $0x8] ss:$16 sps:$4 sm:$0xff]   ;;  %v1817_v6 = vld [vmem:[#allocation8 + $0x24] ss:$16 sps:$4 sm:$0xff]  }
  0x8e   : > { %540 = vmatprep.subr.bf16.mxu0 %v1811_v1  ;;  %593 = vmatprep.subr.bf16.mxu1 %v1813_v2  ;;  %v1819_v7 = vld [vmem:[#allocation8 + $0x2c] ss:$16 sps:$4 sm:$0xff]   ;;  %v1821_v8 = vld [vmem:[#allocation8 + $0x20] ss:$16 sps:$4 sm:$0xff]   ;;  %v1822_v9 = vld [vmem:[#allocation8 + $0x28] ss:$16 sps:$4 sm:$0xff]  }
  0x8f   : > { %541 = vmatpush1.bf16.msra.mxu0 %v1815_v4  ;;  %594 = vmatpush1.bf16.msra.mxu1 %v1816_v5  ;;  %v1823_v10 = vld [vmem:[#allocation8 + $0x44] ss:$16 sps:$4 sm:$0xff]   ;;  %v1825_v11 = vld [vmem:[#allocation8 + $0x4c] ss:$16 sps:$4 sm:$0xff]   ;;  %v1827_v12 = vld [vmem:[#allocation8 + $0x40] ss:$16 sps:$4 sm:$0xff]  }
  0x90   : > { %542 = vmatprep.subr.bf16.mxu0 %v1817_v6  ;;  %595 = vmatprep.subr.bf16.mxu1 %v1819_v7  ;;  %v1828_v13 = vld [vmem:[#allocation8 + $0x48] ss:$16 sps:$4 sm:$0xff]   ;;  %v1829_v14 = vld [vmem:[#allocation8 + $0x64] ss:$16 sps:$4 sm:$0xff]   ;;  %v1831_v15 = vld [vmem:[#allocation8 + $0x6c] ss:$16 sps:$4 sm:$0xff]   ;;  %v348_v7 = vlaneseq }
  0x91   : > { %v1833_v16 = vld [vmem:[#allocation8 + $0x60] ss:$16 sps:$4 sm:$0xff]   ;;  %v1834_v17 = vld [vmem:[#allocation8 + $0x68] ss:$16 sps:$4 sm:$0xff]   ;;  %v1835_v18 = vld [vmem:[#allocation8 + $0x84] ss:$16 sps:$4 sm:$0xff]  }
  0x92   : > { %v1837_v19 = vld [vmem:[#allocation8 + $0x8c] ss:$16 sps:$4 sm:$0xff]   ;;  %v1839_v20 = vld [vmem:[#allocation8 + $0x80] ss:$16 sps:$4 sm:$0xff]   ;;  %v1840_v21 = vld [vmem:[#allocation8 + $0x88] ss:$16 sps:$4 sm:$0xff]  }
  0x93   : > { %543 = vmatpush1.bf16.msra.mxu0 %v1821_v8  ;;  %596 = vmatpush1.bf16.msra.mxu1 %v1822_v9  ;;  %v1841_v22 = vld [vmem:[#allocation8 + $0xa4] ss:$16 sps:$4 sm:$0xff]   ;;  %v1843_v23 = vld [vmem:[#allocation8 + $0xac] ss:$16 sps:$4 sm:$0xff]   ;;  %v1845_v24 = vld [vmem:[#allocation8 + $0xa0] ss:$16 sps:$4 sm:$0xff]  }
  0x94   : > { %544 = vmatprep.subr.bf16.mxu0 %v1823_v10  ;;  %597 = vmatprep.subr.bf16.mxu1 %v1825_v11  ;;  %v1846_v25 = vld [vmem:[#allocation8 + $0xa8] ss:$16 sps:$4 sm:$0xff]   ;;  %v1847_v26 = vld [vmem:[#allocation8 + $0xc4] ss:$16 sps:$4 sm:$0xff]   ;;  %v1849_v27 = vld [vmem:[#allocation8 + $0xcc] ss:$16 sps:$4 sm:$0xff]  }
  0x95   : > { %v1851_v28 = vld [vmem:[#allocation8 + $0xc0] ss:$16 sps:$4 sm:$0xff]   ;;  %v1852_v29 = vld [vmem:[#allocation8 + $0xc8] ss:$16 sps:$4 sm:$0xff]   ;;  %v1853_v30 = vld [vmem:[#allocation8 + $0xe4] ss:$16 sps:$4 sm:$0xff]  }
  0x96   : > { %v1855_v31 = vld [vmem:[#allocation8 + $0xec] ss:$16 sps:$4 sm:$0xff]   ;;  %v1857_v32 = vld [vmem:[#allocation8 + $0xe0] ss:$16 sps:$4 sm:$0xff]   ;;  %v1858_v33 = vld [vmem:[#allocation8 + $0xe8] ss:$16 sps:$4 sm:$0xff]  }
  0x97   : > { %545 = vmatpush1.bf16.msra.mxu0 %v1827_v12  ;;  %598 = vmatpush1.bf16.msra.mxu1 %v1828_v13  ;;  %v2420_v34 = vld [vmem:[#allocation10 + $0x4] ss:$16 sps:$4 sm:$0xff]   ;;  %v2422_v35 = vld [vmem:[#allocation10 + $0xc] ss:$16 sps:$4 sm:$0xff]   ;;  %v2426_v37 = vld [vmem:[#allocation10] ss:$16 sps:$4 sm:$0xff]  }
  0x98   : > { %546 = vmatprep.subr.bf16.mxu0 %v1829_v14  ;;  %599 = vmatprep.subr.bf16.mxu1 %v1831_v15  ;;  %v1859_v36 = vld [vmem:[%s266_s21] sm:$0xff]   ;;  %v2428_v38 = vld [vmem:[#allocation10 + $0x8] ss:$16 sps:$4 sm:$0xff]   ;;  %v2434_v40 = vld [vmem:[#allocation10 + $0x2c] ss:$16 sps:$4 sm:$0xff]   ;;  %v349_v8 = vshrl.u32 %v348_v7, 7 }
  0x99   : > { %v2430_v39 = vld [vmem:[#allocation10 + $0x24] ss:$16 sps:$4 sm:$0xff]   ;;  %v2436_v41 = vld [vmem:[#allocation10 + $0x20] ss:$16 sps:$4 sm:$0xff]   ;;  %v2438_v42 = vld [vmem:[#allocation10 + $0x28] ss:$16 sps:$4 sm:$0xff]  }
  0x9a   : > { %v2442_v43 = vld [vmem:[#allocation10 + $0x44] ss:$16 sps:$4 sm:$0xff]   ;;  %v2446_v44 = vld [vmem:[#allocation10 + $0x4c] ss:$16 sps:$4 sm:$0xff]   ;;  %v2448_v45 = vld [vmem:[#allocation10 + $0x40] ss:$16 sps:$4 sm:$0xff]  }
  0x9b   : > { %547 = vmatpush1.bf16.msra.mxu0 %v1833_v16  ;;  %600 = vmatpush1.bf16.msra.mxu1 %v1834_v17  ;;  %v1894_v46 = vld [vmem:[%s266_s21 + $0x8] sm:$0xff]   ;;  %v2460_v48 = vld [vmem:[#allocation10 + $0x64] ss:$16 sps:$4 sm:$0xff]   ;;  %v2466_v50 = vld [vmem:[#allocation10 + $0x60] ss:$16 sps:$4 sm:$0xff]   ;;  %v350_v9 = vsub.s32 0, %v349_v8 }
  0x9c   : > { %548 = vmatprep.subr.bf16.mxu0 %v1835_v18  ;;  %601 = vmatprep.subr.bf16.mxu1 %v1837_v19  ;;  %v2456_v47 = vld [vmem:[#allocation10 + $0x48] ss:$16 sps:$4 sm:$0xff]   ;;  %v2462_v49 = vld [vmem:[#allocation10 + $0x6c] ss:$16 sps:$4 sm:$0xff]   ;;  %v2472_v52 = vld [vmem:[#allocation10 + $0x84] ss:$16 sps:$4 sm:$0xff]  }
  0x9d   : > { %v2468_v51 = vld [vmem:[#allocation10 + $0x68] ss:$16 sps:$4 sm:$0xff]   ;;  %v2474_v53 = vld [vmem:[#allocation10 + $0x8c] ss:$16 sps:$4 sm:$0xff]   ;;  %v2480_v54 = vld [vmem:[#allocation10 + $0x80] ss:$16 sps:$4 sm:$0xff]  }
  0x9e   : > { %v2482_v55 = vld [vmem:[#allocation10 + $0x88] ss:$16 sps:$4 sm:$0xff]   ;;  %v2486_v56 = vld [vmem:[#allocation10 + $0xa4] ss:$16 sps:$4 sm:$0xff]   ;;  %v2488_v57 = vld [vmem:[#allocation10 + $0xac] ss:$16 sps:$4 sm:$0xff]  }
  0x9f   : > { %549 = vmatpush1.bf16.msra.mxu0 %v1839_v20  ;;  %602 = vmatpush1.bf16.msra.mxu1 %v1840_v21  ;;  %v2492_v58 = vld [vmem:[#allocation10 + $0xa0] ss:$16 sps:$4 sm:$0xff]   ;;  %v2494_v59 = vld [vmem:[#allocation10 + $0xa8] ss:$16 sps:$4 sm:$0xff]   ;;  %v2498_v60 = vld [vmem:[#allocation10 + $0xc4] ss:$16 sps:$4 sm:$0xff]  }
  0xa0   : > { %550 = vmatprep.subr.bf16.mxu0 %v1841_v22  ;;  %603 = vmatprep.subr.bf16.mxu1 %v1843_v23  ;;  %v2500_v61 = vld [vmem:[#allocation10 + $0xcc] ss:$16 sps:$4 sm:$0xff]   ;;  %v2504_v62 = vld [vmem:[#allocation10 + $0xc0] ss:$16 sps:$4 sm:$0xff]   ;;  %v2506_v63 = vld [vmem:[#allocation10 + $0xc8] ss:$16 sps:$4 sm:$0xff]  }
  0xa1   : > { %v2510_v0 = vld [vmem:[#allocation10 + $0xe4] ss:$16 sps:$4 sm:$0xff]   ;;  %v2512_v1 = vld [vmem:[#allocation10 + $0xec] ss:$16 sps:$4 sm:$0xff]   ;;  %v2516_v2 = vld [vmem:[#allocation10 + $0xe0] ss:$16 sps:$4 sm:$0xff]  }
  0xa2   : > { %v2518_v4 = vld [vmem:[#allocation10 + $0xe8] ss:$16 sps:$4 sm:$0xff]   ;;  %v2520_v5 = vld [vmem:[#allocation2] sm:$0xff]  ;;  %v358_v10 = vsub.s32 2, %v349_v8  ;;  %v362_v12 = vsub.s32 3, %v349_v8  ;;  %v354_v13 = vsub.s32 1, %v349_v8 }
  0xa3   : > { %551 = vmatpush1.bf16.msra.mxu0 %v1845_v24  ;;  %604 = vmatpush1.bf16.msra.mxu1 %v1846_v25  ;;  %v672_v6 = vpack.c.bf16 %v2520_v5, %v2520_v5  ;;  %v346_v11 = vld [vmem:[%s2738_s3] sm:$0xf]  ;;  %p975_p10 = scmp.lt.s32.totalorder %s2592_s8, 10  ;;  %s1105_s14 = sadd.s32 1, %s2592_s8 }
  0xa4   : > { %552 = vmatprep.subr.bf16.mxu0 %v1847_v26  ;;  %605 = vmatprep.subr.bf16.mxu1 %v1849_v27  ;;  %v351_v14 = vrot.slane %v346_v11, %v350_v9  ;;  %v359_v15 = vrot.slane %v346_v11, %v358_v10  ;;  %v363_v18 = vrot.slane %v346_v11, %v362_v12  ;;  %p1106_p12 = scmp.lt.s32.totalorder %s1105_s14, 10  ;;  %s1236_s28 = sadd.s32 2, %s2592_s8 }
  0xa5   : > { %v355_v21 = vrot.slane %v346_v11, %v354_v13  ;;  %s976_s16 = scalar_select %p975_p10, 1, 0 }
  0xa6   : > { %s1107_s24 = scalar_select %p1106_p12, 1, 0 }
  0xa7   : > { %553 = vmatpush1.bf16.msra.mxu0 %v1851_v28  ;;  %606 = vmatpush1.bf16.msra.mxu1 %v1852_v29  ;;  %s977_s12 = scvt.s32.f32 %s976_s16  ;;  %p1237_p13 = scmp.lt.s32.totalorder %s1236_s28, 10 }
  0xa8   : > { %554 = vmatprep.subr.bf16.mxu0 %v1853_v30  ;;  %607 = vmatprep.subr.bf16.mxu1 %v1855_v31  ;;  %s1108_s29 = scvt.s32.f32 %s1107_s24  ;;  %s1367_s11 = sadd.s32 3, %s2592_s8 }
  0xa9   : > { %s980_s13 = ssub.f32 1.0, %s977_s12  ;;  %p1368_p0 = scmp.lt.s32.totalorder %s1367_s11, 10 }
  0xaa   : > { %s1111_s18 = ssub.f32 1.0, %s1108_s29  ;;  %p1682_p3 = scmp.ne.s32.totalorder %s2236_s25, 2 }
  0xab   : > { %555 = vmatpush1.bf16.msra.mxu0 %v1857_v32  ;;  %608 = vmatpush1.bf16.msra.mxu1 %v1858_v33  ;;  %s1238_s30 = scalar_select %p1237_p13, 1, 0 }
  0xac   : > { %865 = vmatprep.subr.bf16.mxu0 %v2420_v34  ;;  %906 = vmatprep.subr.bf16.mxu1 %v2422_v35  ;;  %s1369_s10 = scalar_select %p1368_p0, 1, 0 }
  0xad   : > { %s1239_s7 = scvt.s32.f32 %s1238_s30  ;;  %vm2180_vm0 = vmmov (!%p1682_p3), 0  }
  0xae   : > { %573 = vmatmul.mubr.bf16.vlgmr.msra.gmra.mrb[0].mxu0 %v1859_v36  ;;  %626 = vmatmul.mubr.bf16.vlgmr.msra.gmra.mrb[0].mxu1 %v1859_v36  ;;  %s1370_s15 = scvt.s32.f32 %s1369_s10 }
  0xaf   : > { %866 = vmatpush1.bf16.msra.mxu0 %v2426_v37  ;;  %907 = vmatpush1.bf16.msra.mxu1 %v2428_v38  ;;  %s1242_s9 = ssub.f32 1.0, %s1239_s7 }
  0xb0   : > { %867 = vmatprep.subr.bf16.mxu0 %v2430_v39  ;;  %908 = vmatprep.subr.bf16.mxu1 %v2434_v40  ;;  %s1373_s20 = ssub.f32 1.0, %s1370_s15 }
  0xb1   : > { %582 = vmatprep.mubr.bf16.mxu0 %v2745_v3  ;;  %635 = vmatprep.mubr.bf16.mxu1 %v2745_v3 }
  0xb3   : > { %868 = vmatpush1.bf16.msra.mxu0 %v2436_v41  ;;  %909 = vmatpush1.bf16.msra.mxu1 %v2438_v42 }
  0xb4   : > { %869 = vmatprep.subr.bf16.mxu0 %v2442_v43  ;;  %910 = vmatprep.subr.bf16.mxu1 %v2446_v44 }
  0xb6   : > { %583 = vmatmul.mubr.bf16.gmra.mrb[4].mxu0 %v1894_v46  ;;  %636 = vmatmul.mubr.bf16.gmra.mrb[4].mxu1 %v1894_v46 }
  0xb7   : > { %870 = vmatpush1.bf16.msra.mxu0 %v2448_v45  ;;  %911 = vmatpush1.bf16.msra.mxu1 %v2456_v47 }
  0xb8   : > { %871 = vmatprep.subr.bf16.mxu0 %v2460_v48  ;;  %912 = vmatprep.subr.bf16.mxu1 %v2462_v49 }
  0xb9   : > { %897 = vmatprep.mubr.bf16.mxu0 %v2745_v3  ;;  %938 = vmatprep.mubr.bf16.mxu1 %v2745_v3 }
  0xbb   : > { %872 = vmatpush1.bf16.msra.mxu0 %v2466_v50  ;;  %913 = vmatpush1.bf16.msra.mxu1 %v2468_v51 }
  0xbc   : > { %873 = vmatprep.subr.bf16.mxu0 %v2472_v52  ;;  %914 = vmatprep.subr.bf16.mxu1 %v2474_v53 }
  0xbf   : > { %874 = vmatpush1.bf16.msra.mxu0 %v2480_v54  ;;  %915 = vmatpush1.bf16.msra.mxu1 %v2482_v55 }
  0xc0   : > { %875 = vmatprep.subr.bf16.mxu0 %v2486_v56  ;;  %916 = vmatprep.subr.bf16.mxu1 %v2488_v57 }
  0xc3   : > { %876 = vmatpush1.bf16.msra.mxu0 %v2492_v58  ;;  %917 = vmatpush1.bf16.msra.mxu1 %v2494_v59 }
  0xc4   : > { %877 = vmatprep.subr.bf16.mxu0 %v2498_v60  ;;  %918 = vmatprep.subr.bf16.mxu1 %v2500_v61 }
  0xc7   : > { %878 = vmatpush1.bf16.msra.mxu0 %v2504_v62  ;;  %919 = vmatpush1.bf16.msra.mxu1 %v2506_v63 }
  0xc8   : > { %879 = vmatprep.subr.bf16.mxu0 %v2510_v0  ;;  %920 = vmatprep.subr.bf16.mxu1 %v2512_v1 }
  0xcb   : > { %880 = vmatpush1.bf16.msra.mxu0 %v2516_v2  ;;  %921 = vmatpush1.bf16.msra.mxu1 %v2518_v4 }
  0xcc   : > { %995 = vmatprep.subr.bf16.mxu0 %v2420_v34  ;;  %1036 = vmatprep.subr.bf16.mxu1 %v2422_v35 }
  0xce   : > { %898 = vmatmul.mubr.bf16.vlgmr.msra.gmra.mrb[8].mxu0 %v672_v6  ;;  %939 = vmatmul.mubr.bf16.vlgmr.msra.gmra.mrb[8].mxu1 %v672_v6 }
  0xcf   : > { %996 = vmatpush1.bf16.msra.mxu0 %v2426_v37  ;;  %1037 = vmatpush1.bf16.msra.mxu1 %v2428_v38 }
  0xd0   : > { %997 = vmatprep.subr.bf16.mxu0 %v2430_v39  ;;  %1038 = vmatprep.subr.bf16.mxu1 %v2434_v40 }
  0xd1   : > { %1027 = vmatprep.mubr.bf16.mxu0 %v2745_v3  ;;  %1068 = vmatprep.mubr.bf16.mxu1 %v2745_v3 }
  0xd3   : > { %998 = vmatpush1.bf16.msra.mxu0 %v2436_v41  ;;  %1039 = vmatpush1.bf16.msra.mxu1 %v2438_v42 }
  0xd4   : > { %999 = vmatprep.subr.bf16.mxu0 %v2442_v43  ;;  %1040 = vmatprep.subr.bf16.mxu1 %v2446_v44 }
  0xd7   : > { %1000 = vmatpush1.bf16.msra.mxu0 %v2448_v45  ;;  %1041 = vmatpush1.bf16.msra.mxu1 %v2456_v47 }
  0xd8   : > { %1001 = vmatprep.subr.bf16.mxu0 %v2460_v48  ;;  %1042 = vmatprep.subr.bf16.mxu1 %v2462_v49 }
  0xdb   : > { %1002 = vmatpush1.bf16.msra.mxu0 %v2466_v50  ;;  %1043 = vmatpush1.bf16.msra.mxu1 %v2468_v51 }
  0xdc   : > { %1003 = vmatprep.subr.bf16.mxu0 %v2472_v52  ;;  %1044 = vmatprep.subr.bf16.mxu1 %v2474_v53 }
  0xdf   : > { %1004 = vmatpush1.bf16.msra.mxu0 %v2480_v54  ;;  %1045 = vmatpush1.bf16.msra.mxu1 %v2482_v55 }
  0xe0   : > { %1005 = vmatprep.subr.bf16.mxu0 %v2486_v56  ;;  %1046 = vmatprep.subr.bf16.mxu1 %v2488_v57 }
  0xe3   : > { %1006 = vmatpush1.bf16.msra.mxu0 %v2492_v58  ;;  %1047 = vmatpush1.bf16.msra.mxu1 %v2494_v59 }
  0xe4   : > { %1007 = vmatprep.subr.bf16.mxu0 %v2498_v60  ;;  %1048 = vmatprep.subr.bf16.mxu1 %v2500_v61 }
  0xe7   : > { %1008 = vmatpush1.bf16.msra.mxu0 %v2504_v62  ;;  %1049 = vmatpush1.bf16.msra.mxu1 %v2506_v63 }
  0xe8   : > { %1009 = vmatprep.subr.bf16.mxu0 %v2510_v0  ;;  %1050 = vmatprep.subr.bf16.mxu1 %v2512_v1 }
  0xeb   : > { %1010 = vmatpush1.bf16.msra.mxu0 %v2516_v2  ;;  %1051 = vmatpush1.bf16.msra.mxu1 %v2518_v4 }
  0xec   : > { %1126 = vmatprep.subr.bf16.mxu0 %v2420_v34  ;;  %1167 = vmatprep.subr.bf16.mxu1 %v2422_v35 }
 0x181   : > { %v574_v16 = vpop.f32.mrb[0].mxu0  ;;  %v627_v17 = vpop.f32.mrb[0].mxu1 }
 0x182   : > { %v576_v19 = vpop.f32.mrb[1].mxu0  ;;  %v629_v20 = vpop.f32.mrb[1].mxu1 }
 0x183   : > { %v578_v22 = vpop.f32.mrb[2].mxu0  ;;  %v631_v23 = vpop.f32.mrb[2].mxu1 }
 0x184   : > { %v2567_v24 = vadd.f32 %v578_v22, %v351_v14  ;;  %v580_v25 = vpop.f32.mrb[3].mxu0  ;;  %v2569_v26 = vadd.f32 %v631_v23, %v359_v15  ;;  %v633_v27 = vpop.f32.mrb[3].mxu1 }
 0x185   : > { %v2571_v28 = vadd.f32 %v580_v25, %v355_v21  ;;  %v2573_v29 = vadd.f32 %v633_v27, %v363_v18  ;;  %v575_v25 = vadd.f32 %v574_v16, %v351_v14  ;;  %v628_v27 = vadd.f32 %v627_v17, %v359_v15 }
 0x189   : > { %v584_v30 = vpop.f32.mrb[4].mxu0  ;;  %v637_v31 = vpop.f32.mrb[4].mxu1 }
 0x18a   : > { %v2575_v32 = vadd.f32 %v584_v30, %v351_v14  ;;  %v586_v33 = vpop.f32.mrb[5].mxu0  ;;  %v2577_v36 = vadd.f32 %v637_v31, %v359_v15  ;;  %v639_v46 = vpop.f32.mrb[5].mxu1  ;;  %v577_v30 = vadd.f32 %v576_v19, %v355_v21  ;;  %v630_v31 = vadd.f32 %v629_v20, %v363_v18  ;;  %v664_v20 = vld [vmem:[#allocation3] sm:$0xff] }
 0x18b   : > { %v2579_v6 = vadd.f32 %v586_v33, %v355_v21  ;;  %v588_v7 = vpop.f32.mrb[6].mxu0  ;;  %v2581_v8 = vadd.f32 %v639_v46, %v363_v18  ;;  %v641_v9 = vpop.f32.mrb[6].mxu1 }
 0x18c   : > { %2759 = vst [vmem:[#allocation18_spill] sm:$0xff] %v2575_v32  ;;  %2760 = vst [vmem:[#allocation19_spill] sm:$0xff] %v2577_v36  ;;  %v2583_v10 = vadd.f32 %v588_v7, %v351_v14  ;;  %v590_v11 = vpop.f32.mrb[7].mxu0  ;;  %v2585_v12 = vadd.f32 %v641_v9, %v359_v15  ;;  %v643_v13 = vpop.f32.mrb[7].mxu1 }
 0x18d   : > { %2761 = vst [vmem:[#allocation20_spill] sm:$0xff] %v2579_v6  ;;  %2762 = vst [vmem:[#allocation21_spill] sm:$0xff] %v2581_v8  ;;  %v2587_v22 = vadd.f32 %v590_v11, %v355_v21  ;;  %v2589_v23 = vadd.f32 %v643_v13, %v363_v18 }
 0x18e   : > { %2763 = vst [vmem:[#allocation22_spill] sm:$0xff] %v2583_v10  ;;  %2764 = vst [vmem:[#allocation23_spill] sm:$0xff] %v2585_v12 }
 0x18f   : > { %2765 = vst [vmem:[#allocation24_spill] sm:$0xff] %v2587_v22 }
 0x1a1   : > { %v899_v33 = vpop.f32.mrb[8].mxu0  ;;  %v940_v3 = vpop.f32.mrb[8].mxu1 }
 0x1a2   : > { %v947_v46 = vadd.f32 %v899_v33, %v575_v25  ;;  %v949_v8 = vadd.f32 %v940_v3, %v628_v27  ;;  %v901_v6 = vpop.f32.mrb[9].mxu0  ;;  %v942_v7 = vpop.f32.mrb[9].mxu1 }
 0x1a3   : > { %v948_v10 = vadd.f32 %v901_v6, %v577_v30  ;;  %v950_v36 = vadd.f32 %v942_v7, %v630_v31  ;;  %v903_v9 = vpop.f32.mrb[10].mxu0  ;;  %v944_v12 = vpop.f32.mrb[10].mxu1 }
 0x1a4   : > { %v1670_v32 = vmul.f32 -1.442695, %v947_v46  ;;  %v904_v11 = vpop.f32.mrb[11].mxu0  ;;  %v945_v22 = vpop.f32.mrb[11].mxu1 }
 0x1a5   : > { %v1671_v13 = vmul.f32 -1.442695, %v948_v10  ;;  %v1672_v14 = vmul.f32 -1.442695, %v950_v36  ;;  %v981_v36 = vstv %s980_s13  ;;  %v978_v22 = vstv %s977_s12 }
 0x1a6   : > { %1909 = vpow2.f32 %v1670_v32  ;;  %v985_v27 = vmul.f32 %v981_v36, %v664_v20  ;;  %v982_v7 = vmul.f32 %v981_v36, %v2520_v5 }
 0x1a7   : > { %1911 = vpow2.f32 %v1671_v13 }
 0x1a8   : > { %1913 = vpow2.f32 %v1672_v14  ;;  %v2766_v14 = vmov 0  }
 0x1a9   : > { %1915 = vtanh.f32 %v949_v8 }
 0x1b0   : > { %v1910_v15 = vpop.eup %1909 }
 0x1b1   : > { %v1912_v16 = vpop.eup %1911  ;;  %v954_v3 = vadd.f32 1.0, %v1910_v15 }
 0x1b2   : > { %v960_v17 = vadd.f32 1.0, %v1912_v16  ;;  %v1914_v18 = vpop.eup %1913 }
 0x1b3   : > { %1917 = vrcp.f32 %v954_v3  ;;  %v1916_v19 = vpop.eup %1915  ;;  %v967_v10 = vadd.f32 1.0, %v1914_v18 }
 0x1b4   : > { %1919 = vrcp.f32 %v960_v17 }
 0x1b5   : > { %1921 = vrcp.f32 %v967_v10 }
 0x1bd   : > { %v1918_v21 = vpop.eup %1917 }
 0x1be   : > { %v1920_v32 = vpop.eup %1919  ;;  %v971_v6 = vmul.f32 %v1918_v21, %v1916_v19 }
 0x1bf   : > { %v970_v12 = vmul.f32 %v1920_v32, %v664_v20  ;;  %v1922_v31 = vpop.eup %1921 }
 0x1c1   : > { %v972_v25 = vadd.f32 %v971_v6, %v970_v12 }
 0x1c3   : > { %1923 = vtanh.f32 %v972_v25  ;;  %v984_v8 = vmul.f32 %v978_v22, %v972_v25 }
 0x1c5   : > { %v2595_v30 = vadd.f32 %v985_v27, %v984_v8 }
 0x1cd   : > { %v1924_v33 = vpop.eup %1923 }
 0x1ce   : > { %v974_v46 = vmul.f32 %v1924_v33, %v1922_v31 }
 0x1d0   : > { %v979_v9 = vmul.f32 %v978_v22, %v974_v46  ;;  %v1109_v46 = vstv %s1108_s29 }
 0x1d2   : > { %v2598_v11 = vadd.f32 %v982_v7, %v979_v9  ;;  %v1112_v7 = vstv %s1111_s18 }
 0x1d4   : > { %v994_v13 = vpack.c.bf16 %v2598_v11, %v2598_v11 }
 0x1d6   : > { %1028 = vmatmul.mubr.bf16.vlgmr.msra.gmra.mrb[12].mxu0 %v994_v13  ;;  %1069 = vmatmul.mubr.bf16.vlgmr.msra.gmra.mrb[12].mxu1 %v994_v13 }
 0x1d7   : > { %1127 = vmatpush1.bf16.msra.mxu0 %v2426_v37  ;;  %1168 = vmatpush1.bf16.msra.mxu1 %v2428_v38 }
 0x1d8   : > { %1128 = vmatprep.subr.bf16.mxu0 %v2430_v39  ;;  %1169 = vmatprep.subr.bf16.mxu1 %v2434_v40 }
 0x1d9   : > { %1158 = vmatprep.mubr.bf16.mxu0 %v2766_v14  ;;  %1199 = vmatprep.mubr.bf16.mxu1 %v2766_v14 }
 0x1db   : > { %1129 = vmatpush1.bf16.msra.mxu0 %v2436_v41  ;;  %1170 = vmatpush1.bf16.msra.mxu1 %v2438_v42 }
 0x1dc   : > { %1130 = vmatprep.subr.bf16.mxu0 %v2442_v43  ;;  %1171 = vmatprep.subr.bf16.mxu1 %v2446_v44 }
 0x1df   : > { %1131 = vmatpush1.bf16.msra.mxu0 %v2448_v45  ;;  %1172 = vmatpush1.bf16.msra.mxu1 %v2456_v47 }
 0x1e0   : > { %1132 = vmatprep.subr.bf16.mxu0 %v2460_v48  ;;  %1173 = vmatprep.subr.bf16.mxu1 %v2462_v49 }
 0x1e3   : > { %1133 = vmatpush1.bf16.msra.mxu0 %v2466_v50  ;;  %1174 = vmatpush1.bf16.msra.mxu1 %v2468_v51 }
 0x1e4   : > { %1134 = vmatprep.subr.bf16.mxu0 %v2472_v52  ;;  %1175 = vmatprep.subr.bf16.mxu1 %v2474_v53 }
 0x1e7   : > { %1135 = vmatpush1.bf16.msra.mxu0 %v2480_v54  ;;  %1176 = vmatpush1.bf16.msra.mxu1 %v2482_v55 }
 0x1e8   : > { %1136 = vmatprep.subr.bf16.mxu0 %v2486_v56  ;;  %1177 = vmatprep.subr.bf16.mxu1 %v2488_v57 }
 0x1eb   : > { %1137 = vmatpush1.bf16.msra.mxu0 %v2492_v58  ;;  %1178 = vmatpush1.bf16.msra.mxu1 %v2494_v59 }
 0x1ec   : > { %1138 = vmatprep.subr.bf16.mxu0 %v2498_v60  ;;  %1179 = vmatprep.subr.bf16.mxu1 %v2500_v61 }
 0x1ef   : > { %1139 = vmatpush1.bf16.msra.mxu0 %v2504_v62  ;;  %1180 = vmatpush1.bf16.msra.mxu1 %v2506_v63 }
 0x1f0   : > { %1140 = vmatprep.subr.bf16.mxu0 %v2510_v0  ;;  %1181 = vmatprep.subr.bf16.mxu1 %v2512_v1 }
 0x1f3   : > { %1141 = vmatpush1.bf16.msra.mxu0 %v2516_v2  ;;  %1182 = vmatpush1.bf16.msra.mxu1 %v2518_v4 }
 0x1f4   : > { %1257 = vmatprep.subr.bf16.mxu0 %v2420_v34  ;;  %1298 = vmatprep.subr.bf16.mxu1 %v2422_v35 }
 0x2a9   : > { %v1029_v5 = vpop.f32.mrb[12].mxu0  ;;  %v1070_v15 = vpop.f32.mrb[12].mxu1 }
 0x2aa   : > { %v1077_v16 = vadd.f32 %v1029_v5, %v2567_v24  ;;  %v1079_v3 = vadd.f32 %v1070_v15, %v2569_v26  ;;  %v1031_v17 = vpop.f32.mrb[13].mxu0  ;;  %v1072_v18 = vpop.f32.mrb[13].mxu1  ;;  %v1116_v5 = vmul.f32 %v1112_v7, %v2595_v30 }
 0x2ab   : > { %v1078_v19 = vadd.f32 %v1031_v17, %v2571_v28  ;;  %v1080_v20 = vadd.f32 %v1072_v18, %v2573_v29  ;;  %v1033_v21 = vpop.f32.mrb[14].mxu0  ;;  %v1074_v32 = vpop.f32.mrb[14].mxu1 }
 0x2ac   : > { %v1673_v6 = vmul.f32 -1.442695, %v1077_v16  ;;  %v1034_v10 = vpop.f32.mrb[15].mxu0  ;;  %v1075_v34 = vpop.f32.mrb[15].mxu1 }
 0x2ad   : > { %v1674_v36 = vmul.f32 -1.442695, %v1078_v19  ;;  %v1675_v35 = vmul.f32 -1.442695, %v1080_v20  ;;  %v1113_v19 = vmul.f32 %v1112_v7, %v2598_v11  ;;  %v1243_v11 = vstv %s1242_s9  ;;  %v2773_v7 = vld [vmem:[#allocation24_spill] sm:$0xff] }
 0x2ae   : > { %1925 = vpow2.f32 %v1673_v6 }
 0x2af   : > { %1927 = vpow2.f32 %v1674_v36 }
 0x2b0   : > { %1929 = vpow2.f32 %v1675_v35 }
 0x2b1   : > { %1931 = vtanh.f32 %v1079_v3 }
 0x2b8   : > { %v1926_v12 = vpop.eup %1925 }
 0x2b9   : > { %v1928_v24 = vpop.eup %1927  ;;  %v1084_v26 = vadd.f32 1.0, %v1926_v12 }
 0x2ba   : > { %v1090_v22 = vadd.f32 1.0, %v1928_v24  ;;  %v1930_v28 = vpop.eup %1929 }
 0x2bb   : > { %1933 = vrcp.f32 %v1084_v26  ;;  %v1932_v29 = vpop.eup %1931  ;;  %v1097_v31 = vadd.f32 1.0, %v1930_v28 }
 0x2bc   : > { %1935 = vrcp.f32 %v1090_v22 }
 0x2bd   : > { %1937 = vrcp.f32 %v1097_v31 }
 0x2c5   : > { %v1934_v25 = vpop.eup %1933 }
 0x2c6   : > { %v1936_v27 = vpop.eup %1935  ;;  %v1101_v8 = vmul.f32 %v1934_v25, %v1932_v29  ;;  %v2771_v25 = vld [vmem:[#allocation22_spill] sm:$0xff] }
 0x2c7   : > { %v1100_v33 = vmul.f32 %v1936_v27, %v2595_v30  ;;  %v1938_v16 = vpop.eup %1937  ;;  %v1240_v30 = vstv %s1239_s7 }
 0x2c9   : > { %v1102_v9 = vadd.f32 %v1101_v8, %v1100_v33  ;;  %v2772_v8 = vld [vmem:[#allocation23_spill] sm:$0xff] }
 0x2cb   : > { %1939 = vtanh.f32 %v1102_v9  ;;  %v1115_v13 = vmul.f32 %v1109_v46, %v1102_v9 }
 0x2cd   : > { %v2643_v15 = vadd.f32 %v1116_v5, %v1115_v13 }
 0x2cf   : > { %v1247_v6 = vmul.f32 %v1243_v11, %v2643_v15 }
 0x2d5   : > { %v1940_v3 = vpop.eup %1939 }
 0x2d6   : > { %v1104_v17 = vmul.f32 %v1940_v3, %v1938_v16 }
 0x2d8   : > { %v1110_v18 = vmul.f32 %v1109_v46, %v1104_v17 }
 0x2da   : > { %v2646_v20 = vadd.f32 %v1113_v19, %v1110_v18 }
 0x2dc   : > { %v1125_v21 = vpack.c.bf16 %v2646_v20, %v2646_v20  ;;  %v1244_v24 = vmul.f32 %v1243_v11, %v2646_v20 }
 0x2de   : > { %1159 = vmatmul.mubr.bf16.vlgmr.msra.gmra.mrb[16].mxu0 %v1125_v21  ;;  %1200 = vmatmul.mubr.bf16.vlgmr.msra.gmra.mrb[16].mxu1 %v1125_v21 }
 0x2df   : > { %1258 = vmatpush1.bf16.msra.mxu0 %v2426_v37  ;;  %1299 = vmatpush1.bf16.msra.mxu1 %v2428_v38 }
 0x2e0   : > { %1259 = vmatprep.subr.bf16.mxu0 %v2430_v39  ;;  %1300 = vmatprep.subr.bf16.mxu1 %v2434_v40  ;;  %v2767_v39 = vld [vmem:[#allocation18_spill] sm:$0xff] }
 0x2e1   : > { %1289 = vmatprep.mubr.bf16.mxu0 %v2766_v14  ;;  %1330 = vmatprep.mubr.bf16.mxu1 %v2766_v14 }
 0x2e3   : > { %1260 = vmatpush1.bf16.msra.mxu0 %v2436_v41  ;;  %1301 = vmatpush1.bf16.msra.mxu1 %v2438_v42  ;;  %v2768_v41 = vld [vmem:[#allocation19_spill] sm:$0xff] }
 0x2e4   : > { %1261 = vmatprep.subr.bf16.mxu0 %v2442_v43  ;;  %1302 = vmatprep.subr.bf16.mxu1 %v2446_v44 }
 0x2e7   : > { %1262 = vmatpush1.bf16.msra.mxu0 %v2448_v45  ;;  %1303 = vmatpush1.bf16.msra.mxu1 %v2456_v47  ;;  %v2769_v45 = vld [vmem:[#allocation20_spill] sm:$0xff] }
 0x2e8   : > { %1263 = vmatprep.subr.bf16.mxu0 %v2460_v48  ;;  %1304 = vmatprep.subr.bf16.mxu1 %v2462_v49  ;;  %v2770_v48 = vld [vmem:[#allocation21_spill] sm:$0xff] }
 0x2eb   : > { %1264 = vmatpush1.bf16.msra.mxu0 %v2466_v50  ;;  %1305 = vmatpush1.bf16.msra.mxu1 %v2468_v51 }
 0x2ec   : > { %1265 = vmatprep.subr.bf16.mxu0 %v2472_v52  ;;  %1306 = vmatprep.subr.bf16.mxu1 %v2474_v53 }
 0x2ef   : > { %1266 = vmatpush1.bf16.msra.mxu0 %v2480_v54  ;;  %1307 = vmatpush1.bf16.msra.mxu1 %v2482_v55 }
 0x2f0   : > { %1267 = vmatprep.subr.bf16.mxu0 %v2486_v56  ;;  %1308 = vmatprep.subr.bf16.mxu1 %v2488_v57 }
 0x2f3   : > { %1268 = vmatpush1.bf16.msra.mxu0 %v2492_v58  ;;  %1309 = vmatpush1.bf16.msra.mxu1 %v2494_v59 }
 0x2f4   : > { %1269 = vmatprep.subr.bf16.mxu0 %v2498_v60  ;;  %1310 = vmatprep.subr.bf16.mxu1 %v2500_v61 }
 0x2f7   : > { %1270 = vmatpush1.bf16.msra.mxu0 %v2504_v62  ;;  %1311 = vmatpush1.bf16.msra.mxu1 %v2506_v63 }
 0x2f8   : > { %1271 = vmatprep.subr.bf16.mxu0 %v2510_v0  ;;  %1312 = vmatprep.subr.bf16.mxu1 %v2512_v1 }
 0x2fb   : > { %1272 = vmatpush1.bf16.msra.mxu0 %v2516_v2  ;;  %1313 = vmatpush1.bf16.msra.mxu1 %v2518_v4 }
 0x3b1   : > { %v1160_v37 = vpop.f32.mrb[16].mxu0  ;;  %v1201_v38 = vpop.f32.mrb[16].mxu1 }
 0x3b2   : > { %v1208_v40 = vadd.f32 %v1160_v37, %v2767_v39  ;;  %v1210_v42 = vadd.f32 %v1201_v38, %v2768_v41  ;;  %v1162_v43 = vpop.f32.mrb[17].mxu0  ;;  %v1203_v44 = vpop.f32.mrb[17].mxu1 }
 0x3b3   : > { %v1209_v47 = vadd.f32 %v1162_v43, %v2769_v45  ;;  %v1211_v49 = vadd.f32 %v1203_v44, %v2770_v48  ;;  %v1164_v50 = vpop.f32.mrb[18].mxu0  ;;  %v1205_v51 = vpop.f32.mrb[18].mxu1  ;;  %v1371_v45 = vstv %s1370_s15 }
 0x3b4   : > { %v1676_v52 = vmul.f32 -1.442695, %v1208_v40  ;;  %v1165_v53 = vpop.f32.mrb[19].mxu0  ;;  %v1206_v54 = vpop.f32.mrb[19].mxu1 }
 0x3b5   : > { %v1677_v55 = vmul.f32 -1.442695, %v1209_v47  ;;  %v1678_v56 = vmul.f32 -1.442695, %v1211_v49  ;;  %v1374_v47 = vstv %s1373_s20 }
 0x3b6   : > { %1941 = vpow2.f32 %v1676_v52 }
 0x3b7   : > { %1943 = vpow2.f32 %v1677_v55 }
 0x3b8   : > { %1945 = vpow2.f32 %v1678_v56 }
 0x3b9   : > { %1947 = vtanh.f32 %v1210_v42 }
 0x3c0   : > { %v1942_v57 = vpop.eup %1941 }
 0x3c1   : > { %v1944_v58 = vpop.eup %1943  ;;  %v1215_v59 = vadd.f32 1.0, %v1942_v57 }
 0x3c2   : > { %v1221_v60 = vadd.f32 1.0, %v1944_v58  ;;  %v1946_v61 = vpop.eup %1945  ;;  %v1973_v58 = vld [vmem:[#allocation11] sm:$0xff] (!%p1682_p3)  }
 0x3c3   : > { %1949 = vrcp.f32 %v1215_v59  ;;  %v1948_v62 = vpop.eup %1947  ;;  %v1228_v2 = vadd.f32 1.0, %v1946_v61  ;;  %v2179_v59 = vmov (!%p1682_p3), 0.0   ;;  %v1975_v61 = vld [vmem:[#allocation11 + $0x10] sm:$0xff] (!%p1682_p3)  }
 0x3c4   : > { %1951 = vrcp.f32 %v1221_v60  ;;  %1706 = vmatprep.subr.bf16.mxu0 (!%p1682_p3), %v2179_v59  ;;  %v1974_v60 = vld [vmem:[#allocation11 + $0x8] sm:$0xff] (!%p1682_p3)  }
 0x3c5   : > { %1953 = vrcp.f32 %v1228_v2  ;;  %v1980_v2 = vld [vmem:[#allocation11 + $0x38] sm:$0xff] (!%p1682_p3)  }
 0x3cd   : > { %v1950_v63 = vpop.eup %1949 }
 0x3ce   : > { %v1952_v0 = vpop.eup %1951  ;;  %v1232_v1 = vmul.f32 %v1950_v63, %v1948_v62  ;;  %v1976_v62 = vld [vmem:[#allocation11 + $0x18] sm:$0xff] (!%p1682_p3)   ;;  %v1977_v63 = vld [vmem:[#allocation11 + $0x20] sm:$0xff] (!%p1682_p3)  }
 0x3cf   : > { %v1231_v4 = vmul.f32 %v1952_v0, %v2643_v15  ;;  %v1954_v34 = vpop.eup %1953  ;;  %v1978_v0 = vld [vmem:[#allocation11 + $0x28] sm:$0xff] (!%p1682_p3)  }
 0x3d1   : > { %v1233_v14 = vadd.f32 %v1232_v1, %v1231_v4  ;;  %v1979_v1 = vld [vmem:[#allocation11 + $0x30] sm:$0xff] (!%p1682_p3)  }
 0x3d3   : > { %1955 = vtanh.f32 %v1233_v14  ;;  %v1246_v32 = vmul.f32 %v1240_v30, %v1233_v14 }
 0x3d5   : > { %v1248_v10 = vadd.f32 %v1247_v6, %v1246_v32 }
 0x3d7   : > { %v1378_v49 = vmul.f32 %v1374_v47, %v1248_v10 }
 0x3dd   : > { %v1956_v36 = vpop.eup %1955 }
 0x3de   : > { %v1235_v35 = vmul.f32 %v1956_v36, %v1954_v34 }
 0x3e0   : > { %v1241_v12 = vmul.f32 %v1240_v30, %v1235_v35  ;;  %v1683_v30 = vld [vmem:[%s2740_s5] ss:$0 sm:$0xff] (!%p1682_p3) }
 0x3e2   : > { %v1245_v26 = vadd.f32 %v1244_v24, %v1241_v12 }
 0x3e4   : > { %v1256_v22 = vpack.c.bf16 %v1245_v26, %v1245_v26  ;;  %v1375_v55 = vmul.f32 %v1374_v47, %v1245_v26 }
 0x3e6   : > { %1290 = vmatmul.mubr.bf16.vlgmr.msra.gmra.mrb[20].mxu0 %v1256_v22  ;;  %1331 = vmatmul.mubr.bf16.vlgmr.msra.gmra.mrb[20].mxu1 %v1256_v22 }
 0x3e7   : > { %1707 = vmatpush3.bf16.msra.mxu0 (!%p1682_p3), %v1973_v58  ;;  %1722 = vmatprep.mubr.msk.bf16.mxu0 (!%p1682_p3), %vm2180_vm0, %v2179_v59 }
 0x3e8   : > { %1708 = vmatprep.subr.bf16.mxu0 (!%p1682_p3), %v2179_v59 }
 0x3eb   : > { %1709 = vmatpush3.bf16.msra.mxu0 (!%p1682_p3), %v1974_v60 }
 0x3ec   : > { %1710 = vmatprep.subr.bf16.mxu0 (!%p1682_p3), %v2179_v59 }
 0x3ef   : > { %1711 = vmatpush3.bf16.msra.mxu0 (!%p1682_p3), %v1975_v61 }
 0x3f0   : > { %1712 = vmatprep.subr.bf16.mxu0 (!%p1682_p3), %v2179_v59 }
 0x3f3   : > { %1713 = vmatpush3.bf16.msra.mxu0 (!%p1682_p3), %v1976_v62 }
 0x3f4   : > { %1714 = vmatprep.subr.bf16.mxu0 (!%p1682_p3), %v2179_v59 }
 0x3f7   : > { %1715 = vmatpush3.bf16.msra.mxu0 (!%p1682_p3), %v1977_v63 }
 0x3f8   : > { %1716 = vmatprep.subr.bf16.mxu0 (!%p1682_p3), %v2179_v59 }
 0x3fb   : > { %1717 = vmatpush3.bf16.msra.mxu0 (!%p1682_p3), %v1978_v0 }
 0x3fc   : > { %1718 = vmatprep.subr.bf16.mxu0 (!%p1682_p3), %v2179_v59 }
 0x3ff   : > { %1719 = vmatpush3.bf16.msra.mxu0 (!%p1682_p3), %v1979_v1 }
 0x400   : > { %1720 = vmatprep.subr.bf16.mxu0 (!%p1682_p3), %v2179_v59 }
 0x403   : > { %1721 = vmatpush3.bf16.msra.mxu0 (!%p1682_p3), %v1980_v2 }
 0x4b9   : > { %v1291_v28 = vpop.f32.mrb[20].mxu0  ;;  %v1332_v29 = vpop.f32.mrb[20].mxu1 }
 0x4ba   : > { %v1339_v27 = vadd.f32 %v1291_v28, %v2771_v25  ;;  %v1341_v31 = vadd.f32 %v1332_v29, %v2772_v8  ;;  %v1293_v33 = vpop.f32.mrb[21].mxu0  ;;  %v1334_v46 = vpop.f32.mrb[21].mxu1 }
 0x4bb   : > { %v1340_v9 = vadd.f32 %v1293_v33, %v2773_v7  ;;  %v1342_v13 = vadd.f32 %v1334_v46, %v2589_v23  ;;  %v1295_v5 = vpop.f32.mrb[22].mxu0  ;;  %v1336_v15 = vpop.f32.mrb[22].mxu1 }
 0x4bc   : > { %v1679_v16 = vmul.f32 -1.442695, %v1339_v27  ;;  %v1296_v3 = vpop.f32.mrb[23].mxu0  ;;  %v1337_v17 = vpop.f32.mrb[23].mxu1 }
 0x4bd   : > { %v1680_v18 = vmul.f32 -1.442695, %v1340_v9  ;;  %v1681_v19 = vmul.f32 -1.442695, %v1342_v13 }
 0x4be   : > { %1957 = vpow2.f32 %v1679_v16 }
 0x4bf   : > { %1959 = vpow2.f32 %v1680_v18 }
 0x4c0   : > { %1961 = vpow2.f32 %v1681_v19 }
 0x4c1   : > { %1963 = vtanh.f32 %v1341_v31 }
 0x4c8   : > { %v1958_v20 = vpop.eup %1957 }
 0x4c9   : > { %v1960_v21 = vpop.eup %1959  ;;  %v1346_v37 = vadd.f32 1.0, %v1958_v20 }
 0x4ca   : > { %v1352_v38 = vadd.f32 1.0, %v1960_v21  ;;  %v1962_v23 = vpop.eup %1961 }
 0x4cb   : > { %1965 = vrcp.f32 %v1346_v37  ;;  %v1964_v39 = vpop.eup %1963  ;;  %v1359_v43 = vadd.f32 1.0, %v1962_v23 }
 0x4cc   : > { %1967 = vrcp.f32 %v1352_v38 }
 0x4cd   : > { %1969 = vrcp.f32 %v1359_v43 }
 0x4d5   : > { %v1966_v40 = vpop.eup %1965 }
 0x4d6   : > { %v1968_v41 = vpop.eup %1967  ;;  %v1363_v42 = vmul.f32 %v1966_v40, %v1964_v39 }
 0x4d7   : > { %v1362_v44 = vmul.f32 %v1968_v41, %v1248_v10  ;;  %v1970_v52 = vpop.eup %1969 }
 0x4d9   : > { %v1364_v48 = vadd.f32 %v1363_v42, %v1362_v44 }
 0x4db   : > { %1971 = vtanh.f32 %v1364_v48  ;;  %v1377_v50 = vmul.f32 %v1371_v45, %v1364_v48 }
 0x4dd   : > { %v1379_v51 = vadd.f32 %v1378_v49, %v1377_v50 }
 0x4df   : > { %1381 = vst [vmem:[#allocation3] sm:$0xff] %v1379_v51 }
 0x4e5   : > { %v1972_v53 = vpop.eup %1971 }
 0x4e6   : > { %v1366_v54 = vmul.f32 %v1972_v53, %v1970_v52  ;;  %1385 = sbr.rel (%p1682_p3) target bundleno = 1477 (0x5c5), region = 68 }
 0x4e8   : > { %v1372_v56 = vmul.f32 %v1371_v45, %v1366_v54 }
 0x4ea   : > { %v1376_v57 = vadd.f32 %v1375_v55, %v1372_v56 }
 0x4ec   : > { %1380 = vst [vmem:[#allocation2] sm:$0xff] %v1376_v57  ;;  %v1386_v4 = vpack.c.bf16 (!%p1682_p3), %v1376_v57, %v1376_v57 }
 0x4ee   : > { %1723 = vmatmul.mubr.bf16.vlgmr.msra.gmra.mrb[0].mxu0 %v1386_v4 }
 0x5c1   : > { %v1492_v11 = vpop.f32.mrb[0].mxu0 }
 0x5c2   : > { %v1493_v14 = vadd.f32 %v1683_v30, %v1492_v11  ;;  %v1724_v32 = vpop.f32.mrb[1].mxu0 }
 0x5c3   : > { %v1495_v6 = vpop.f32.mrb[2].mxu0 }
 0x5c4   : > { %1498 = vst [vmem:[#allocation13] sm:$0xff] %v1493_v14  ;;  %v1725_v10 = vpop.f32.mrb[3].mxu0 }
 0x5c5 PF: > { %p1765_p9 = scmp.eq.s32.totalorder %s2236_s25, 2  ;;  %s2181_s27 = smov [#allocation13]  }
 0x5c6   : > { %s1506_s8 = sshll.u32 %s2181_s27, 4  ;;  %s1507_s8 = int_to_ptr.vmem [resolvable:$true] %s1506_s8 }
 0x5c7   : > { %s2095_s16 = scalar_lea.vmem %s1507_s8, 128  ;;  %p2102_p1 = scmp.lt.s32.totalorder %s1507_s8, %s1507_s8 }
 0x5c8   : > { %p2096_p11 = scmp.ne.s32.totalorder %s1507_s8, %s2095_s16  ;;  %p2103_p8 = scmp.lt.s32.totalorder %s2095_s16, %s2095_s16 }
 0x5ca   : > { %p2097_p2 = pnand %p2096_p11, %p1765_p9  ;;  %p2104_p4 = por %p2103_p8, %p2102_p1 }
 0x5cc   : > { %p2098_p7 = pneg %p2097_p2 }
 0x5ce   : > { %p2105_p5 = pnand %p2104_p4, %p2098_p7 }
 0x5d0   : > { %2108 = shalt.err (!%p2105_p5)
}
 0x5d1   : > { %s2109_s14 = scalar_lea.hbm %s2741_s6, 128 }
 0x5d2   : > { %p2110_p6 = scmp.ne.s32.totalorder %s2741_s6, %s2109_s14  ;;  %p2115_p13 = scmp.lt.u32.totalorder %s2109_s14, %s2741_s6 }
 0x5d4   : > { %p2111_p10 = pnand %p2110_p6, %p1765_p9 }
 0x5d6   : > { %p2112_p12 = pneg %p2111_p10 }
 0x5d8   : > { %p2117_p0 = pnand %p2115_p13, %p2112_p12 }
 0x5da   : > { %2120 = shalt.err (!%p2117_p0)
}
 0x5db   : > { %1741 = dma.vmem_to_hbm [thread:$0]  (%p1765_p9), %s1507_s8, 128, %s2741_s6, [#allocation7]  }
 0x5dc   : > { %2150 = dma.done.wait (%p1765_p9), [#allocation7], 128  }
 0x5dd   : > { %2152 = vsyncadd (%p1765_p9), [#allocation7], 4294967168 }
 0x5de PF: > { %p19_p3 = scmp.ge.s32.totalorder %s2342_s17, 5   ;;  %s2774_s21 = smov %s2159_s22 }
 0x5df   : > { %s2775_s22 = smov %s2163_s23  ;;  %s2776_s23 = smov %s2352_s19 }
 0x5e0   : > { %s2777_s24 = smov %s2342_s17  ;;  %21 = sbr.rel (!%p19_p3) target bundleno = 6 (0x6), region = 105 }
 0x5e7   :  { %1519 = vsyncpa [#allocation6], 1 }
 0x5e8   :  { %1521 = vsyncpa [#allocation6 + $0x1], 1 }
 0x5e9   :  { %1522 = vsyncpa [#allocation9], 1 }
 0x5ea   :  { %1523 = vsyncpa [#allocation12], 1 }
 0x5eb   :  { %1524 = vsyncpa [#allocation7], 1 }
 0x5ec   :  { %1526 = vsyncpa [#allocation7 + $0x1], 1 }

</bundles_post_ra>
